<compile_context>
chip_gen: v7x
topology: tpu7x:2x2x1
jax: 0.10.0
libtpu: 0.0.40
codegen_flags: <defaults>
</compile_context>

<pallas_src>
import jax
import jax.numpy as jnp
import numpy as np
from jax.experimental import pallas as pl
from jax.experimental.pallas import tpu as pltpu


HIDDEN = 16     # module default hidden_size
OUT = 16        # fc output size
UNROLL_T = 32   # fully unroll the recurrence when T <= this


def _round_up(n, m):
    return ((n + m - 1) // m) * m


def gru_fc_kernel(x_ref, wih_ref, bias_ref, bhn_ref, whh_ref,
                  fcw_ref, fcb_ref, out_ref):
    """GRU recurrence over time + final Linear, for one batch tile.

    Working layout is transposed: batch lives on the lane axis.

    x_ref    : (T, Bt)    time-major inputs (input_size == 1)
    wih_ref  : (3H, 1)    [w_ir; w_iz; w_in] as a column (input_size == 1)
    bias_ref : (3H, 1)    [b_ir+b_hr; b_iz+b_hz; b_in]
    bhn_ref  : (H, 1)     b_hn (kept separate: n gate sees r * (W_hn h + b_hn))
    whh_ref  : (3H, H)    stacked [W_hr; W_hz; W_hn]  (raw PyTorch layout)
    fcw_ref  : (OUT, H)   fc.weight (raw layout)
    fcb_ref  : (OUT, 1)   fc.bias
    out_ref  : (OUT, Bt)  transposed output tile (un-transposed in wrapper)
    """
    T, Bt = x_ref.shape
    H = whh_ref.shape[1]
    f32 = jnp.float32

    # Hoist constant loads out of the recurrence.
    whh = whh_ref[...]          # (3H, H)
    wih = wih_ref[...]          # (3H, 1)
    bias = bias_ref[...]        # (3H, 1)
    bhn = bhn_ref[...]          # (H, 1)

    def step(h, gi_t):
        # h: (H, Bt); gi_t: (3H, Bt). One fused MXU matmul on the h chain.
        gh = jnp.dot(whh, h, preferred_element_type=f32)          # (3H, Bt)
        pre_rz = gi_t[0:2 * H] + gh[0:2 * H]
        rz = 0.5 * jnp.tanh(0.5 * pre_rz) + 0.5                   # sigmoid, 1 EUP op
        r = rz[0:H]
        z = rz[H:2 * H]
        n = jnp.tanh(gi_t[2 * H:3 * H] + r * (gh[2 * H:3 * H] + bhn))
        return n + z * (h - n)                                     # == (1-z)*n + z*h

    h = jnp.zeros((H, Bt), f32)

    if T <= UNROLL_T:
        # Small T: hoist the input projection for all steps in one dense
        # broadcast pass ((T,1,Bt)*(1,3H,1)+(1,3H,1) -> (T,3H,Bt)); the fully
        # unrolled loop then only carries the serial h dependency chain.
        gi_all = (x_ref[...].reshape(T, 1, Bt) * wih.reshape(1, 3 * H, 1)
                  + bias.reshape(1, 3 * H, 1))
        for t in range(T):
            h = step(h, gi_all[t])
    else:
        # Large T: bound code size / vreg pressure / VMEM (no (T,3H,Bt) buffer).
        # The per-step input projection is independent of h, so it sits off the
        # serial dependency chain and overlaps with the matmul.
        def body(t, h):
            gi_t = x_ref[pl.ds(t, 1), :] * wih + bias              # (3H, Bt)
            return step(h, gi_t)
        h = jax.lax.fori_loop(0, T, body, h, unroll=4)

    out_ref[...] = (jnp.dot(fcw_ref[...], h, preferred_element_type=f32)
                    + fcb_ref[...])


def shape_embedding_rnn_pallas(x, packed, hidden=HIDDEN, out=OUT, batch_tile=256):
    """x: (B, T) float. Returns (B, out)."""
    B, T = x.shape
    H = hidden

    # Batch is the lane axis -> pad/tile it in multiples of 128.
    Bp_min = _round_up(B, 128)
    Bt = min(_round_up(batch_tile, 128), Bp_min)
    # v7x megacore: keep >= 2 grid tiles when the batch allows, so the
    # "parallel" grid axis can shard across both TensorCores.
    if Bp_min // Bt < 2 and Bp_min >= 256:
        Bt = _round_up(Bp_min // 2, 128)
    Bp = _round_up(B, Bt)

    # Time-major (T, Bp): batch contiguous on the lane axis -> dense DMA,
    # per-step access in the kernel is a cheap static sublane slice.
    x_tm = jnp.transpose(jnp.pad(x.astype(jnp.float32), ((0, Bp - B), (0, 0))))

    grid = (Bp // Bt,)
    y = pl.pallas_call(
        gru_fc_kernel,
        out_shape=jax.ShapeDtypeStruct((out, Bp), jnp.float32),
        grid_spec=pltpu.PrefetchScalarGridSpec(
            num_scalar_prefetch=0,
            grid=grid,
            in_specs=[
                pl.BlockSpec((T, Bt),    lambda i: (0, i)),    # x (time-major)
                pl.BlockSpec((3 * H, 1), lambda i: (0, 0)),    # w_ih column
                pl.BlockSpec((3 * H, 1), lambda i: (0, 0)),    # folded biases
                pl.BlockSpec((H, 1),     lambda i: (0, 0)),    # b_hn
                pl.BlockSpec((3 * H, H), lambda i: (0, 0)),    # W_hh stacked
                pl.BlockSpec((out, H),   lambda i: (0, 0)),    # fc.weight
                pl.BlockSpec((out, 1),   lambda i: (0, 0)),    # fc.bias
            ],
            out_specs=pl.BlockSpec((out, Bt), lambda i: (0, i)),
        ),
        compiler_params=pltpu.CompilerParams(
            dimension_semantics=("parallel",)),
    )(x_tm, packed["wih_col"], packed["bias_col"], packed["bhn_col"],
      packed["whh"], packed["fcw"], packed["fcb_col"])

    return jnp.transpose(y)[:B]                                 # (B, out)


def init_raw_params(key, hidden=HIDDEN, out=OUT):
    """Deterministic init mirroring PyTorch GRU/Linear uniform(-1/sqrt(H), 1/sqrt(H)).

    Returned in raw PyTorch layout (gate order r, z, n)."""
    ks = jax.random.split(key, 6)
    bound = 1.0 / np.sqrt(hidden)
    u = lambda k, shape: jax.random.uniform(
        k, shape, dtype=jnp.float32, minval=-bound, maxval=bound)
    return {
        "w_ih": u(ks[0], (3 * hidden, 1)),        # weight_ih_l0
        "w_hh": u(ks[1], (3 * hidden, hidden)),   # weight_hh_l0
        "b_ih": u(ks[2], (3 * hidden,)),
        "b_hh": u(ks[3], (3 * hidden,)),
        "fc_w": u(ks[4], (out, hidden)),          # fc.weight
        "fc_b": u(ks[5], (out,)),
    }


def pack_params(raw, hidden=HIDDEN):
    """Repack raw PyTorch-layout weights for the transposed (lane=batch) kernel.

    In this layout the raw (3H, H) W_hh and (OUT, H) fc.weight are used as-is;
    only the biases are folded/column-ized."""
    H = hidden
    b_ih = raw["b_ih"].reshape(3, H)
    b_hh = raw["b_hh"].reshape(3, H)
    bias = jnp.concatenate(
        [b_ih[0] + b_hh[0],        # r: b_ir + b_hr (folded)
         b_ih[1] + b_hh[1],        # z: b_iz + b_hz (folded)
         b_ih[2]],                 # n: b_in only (b_hn stays separate)
        axis=0)
    return {
        "wih_col":  raw["w_ih"].reshape(3 * H, 1),      # (3H, 1)
        "bias_col": bias.reshape(3 * H, 1),             # (3H, 1)
        "bhn_col":  b_hh[2].reshape(H, 1),              # (H, 1)
        "whh":      raw["w_hh"],                        # (3H, H)
        "fcw":      raw["fc_w"],                        # (OUT, H)
        "fcb_col":  raw["fc_b"].reshape(-1, 1),         # (OUT, 1)
    }


def reference_forward(x, raw, hidden=HIDDEN):
    """Pure-JAX reference of the PyTorch GRU + Linear forward (raw weights)."""
    H = hidden
    B, T = x.shape
    w_ih, w_hh = raw["w_ih"], raw["w_hh"]
    b_ih, b_hh = raw["b_ih"], raw["b_hh"]
    h = jnp.zeros((B, H), jnp.float32)
    for t in range(T):
        x_t = x[:, t:t + 1]                       # (B, 1)
        gi = x_t @ w_ih.T + b_ih                  # (B, 3H)
        gh = h @ w_hh.T + b_hh                    # (B, 3H)
        r = jax.nn.sigmoid(gi[:, 0:H] + gh[:, 0:H])
        z = jax.nn.sigmoid(gi[:, H:2 * H] + gh[:, H:2 * H])
        n = jnp.tanh(gi[:, 2 * H:] + r * gh[:, 2 * H:])
        h = (1.0 - z) * n + z * h
    return h @ raw["fc_w"].T + raw["fc_b"]


# TODO(synk): only the default rnn_type='gru' path of ShapeEmbeddingRNN is
# implemented; the 'lstm' / 'rnn' variants would need their own recurrences.

if __name__ == "__main__":
    key = jax.random.PRNGKey(0)
    k_x, k_p = jax.random.split(key)

    B, T = 2, 8
    x = jax.random.normal(k_x, (B, T), dtype=jnp.float32)   # (batch, seq)
    raw = init_raw_params(k_p)
    packed = pack_params(raw)

    out = shape_embedding_rnn_pallas(x, packed)
    out = jax.block_until_ready(out)

    ref = reference_forward(x, raw)
    np.testing.assert_allclose(np.asarray(out), np.asarray(ref),
                               rtol=1e-5, atol=1e-5)
    assert out.shape == (B, OUT)
    print("KERNEL_OK")
</pallas_src>

<mosaic_0001>
module attributes {stable_mosaic.version = 11 : i64} {
  func.func @gru_fc_kernel(%arg0: i32, %arg1: memref<8x128xf32, #tpu.memory_space<vmem>>, %arg2: memref<48x1xf32, #tpu.memory_space<vmem>>, %arg3: memref<48x1xf32, #tpu.memory_space<vmem>>, %arg4: memref<16x1xf32, #tpu.memory_space<vmem>>, %arg5: memref<48x16xf32, #tpu.memory_space<vmem>>, %arg6: memref<16x16xf32, #tpu.memory_space<vmem>>, %arg7: memref<16x1xf32, #tpu.memory_space<vmem>>, %arg8: memref<16x128xf32, #tpu.memory_space<vmem>>) attributes {dimension_semantics = [#tpu.dimension_semantics<parallel>], iteration_bounds = array<i64: 1>, scalar_prefetch = 0 : i64, scratch_operands = 0 : i64, tpu.core_type = #tpu.core_type<tc>, window_params = [{transform_indices = @transform_0, window_bounds = array<i64: 8, 128>}, {pipeline_mode = #tpu.pipeline_mode<synchronous>, transform_indices = @transform_1, window_bounds = array<i64: 48, 1>}, {pipeline_mode = #tpu.pipeline_mode<synchronous>, transform_indices = @transform_2, window_bounds = array<i64: 48, 1>}, {pipeline_mode = #tpu.pipeline_mode<synchronous>, transform_indices = @transform_3, window_bounds = array<i64: 16, 1>}, {pipeline_mode = #tpu.pipeline_mode<synchronous>, transform_indices = @transform_4, window_bounds = array<i64: 48, 16>}, {pipeline_mode = #tpu.pipeline_mode<synchronous>, transform_indices = @transform_5, window_bounds = array<i64: 16, 16>}, {pipeline_mode = #tpu.pipeline_mode<synchronous>, transform_indices = @transform_6, window_bounds = array<i64: 16, 1>}, {transform_indices = @transform_7, window_bounds = array<i64: 16, 128>}]} {
    %c0 = arith.constant 0 : index
    %c0_0 = arith.constant 0 : index
    %0 = vector.load %arg5[%c0, %c0_0] : memref<48x16xf32, #tpu.memory_space<vmem>>, vector<48x16xf32>
    %c0_1 = arith.constant 0 : index
    %c0_2 = arith.constant 0 : index
    %1 = vector.load %arg2[%c0_1, %c0_2] : memref<48x1xf32, #tpu.memory_space<vmem>>, vector<48x1xf32>
    %c0_3 = arith.constant 0 : index
    %c0_4 = arith.constant 0 : index
    %2 = vector.load %arg3[%c0_3, %c0_4] : memref<48x1xf32, #tpu.memory_space<vmem>>, vector<48x1xf32>
    %c0_5 = arith.constant 0 : index
    %c0_6 = arith.constant 0 : index
    %3 = vector.load %arg4[%c0_5, %c0_6] : memref<16x1xf32, #tpu.memory_space<vmem>>, vector<16x1xf32>
    %cst = arith.constant 0.000000e+00 : f32
    %4 = vector.broadcast %cst : f32 to vector<16x128xf32>
    %c0_7 = arith.constant 0 : index
    %c0_8 = arith.constant 0 : index
    %5 = vector.load %arg1[%c0_7, %c0_8] : memref<8x128xf32, #tpu.memory_space<vmem>>, vector<8x128xf32>
    %6 = vector.shape_cast %5 : vector<8x128xf32> to vector<8x1x128xf32>
    %7 = vector.shape_cast %1 : vector<48x1xf32> to vector<1x48x1xf32>
    %8 = vector.broadcast %6 : vector<8x1x128xf32> to vector<8x48x128xf32>
    %9 = vector.broadcast %7 : vector<1x48x1xf32> to vector<8x48x128xf32>
    %10 = arith.mulf %8, %9 : vector<8x48x128xf32>
    %11 = vector.shape_cast %2 : vector<48x1xf32> to vector<1x48x1xf32>
    %12 = vector.broadcast %11 : vector<1x48x1xf32> to vector<8x48x128xf32>
    %13 = arith.addf %10, %12 : vector<8x48x128xf32>
    %14 = vector.extract_strided_slice %13 {offsets = [0, 0, 0], sizes = [1, 48, 128], strides = [1, 1, 1]} : vector<8x48x128xf32> to vector<1x48x128xf32>
    %15 = vector.shape_cast %14 : vector<1x48x128xf32> to vector<48x128xf32>
    %cst_9 = arith.constant dense<0.000000e+00> : vector<48x128xf32>
    %16 = tpu.matmul %0, %4, %cst_9 {dimension_numbers = #tpu.dot_dimension_numbers<[1], [0], [0], [1], [0, 0, 1, 1], [], []>} : vector<48x16xf32>, vector<16x128xf32>, vector<48x128xf32> -> vector<48x128xf32>
    %17 = vector.extract_strided_slice %15 {offsets = [0, 0], sizes = [32, 128], strides = [1, 1]} : vector<48x128xf32> to vector<32x128xf32>
    %18 = vector.extract_strided_slice %16 {offsets = [0, 0], sizes = [32, 128], strides = [1, 1]} : vector<48x128xf32> to vector<32x128xf32>
    %19 = arith.addf %17, %18 : vector<32x128xf32>
    %cst_10 = arith.constant 5.000000e-01 : f32
    %20 = vector.broadcast %cst_10 : f32 to vector<32x128xf32>
    %21 = arith.mulf %20, %19 : vector<32x128xf32>
    %22 = math.tanh %21 : vector<32x128xf32>
    %cst_11 = arith.constant 5.000000e-01 : f32
    %23 = vector.broadcast %cst_11 : f32 to vector<32x128xf32>
    %24 = arith.mulf %23, %22 : vector<32x128xf32>
    %cst_12 = arith.constant 5.000000e-01 : f32
    %25 = vector.broadcast %cst_12 : f32 to vector<32x128xf32>
    %26 = arith.addf %24, %25 : vector<32x128xf32>
    %27 = vector.extract_strided_slice %26 {offsets = [0, 0], sizes = [16, 128], strides = [1, 1]} : vector<32x128xf32> to vector<16x128xf32>
    %28 = vector.extract_strided_slice %26 {offsets = [16, 0], sizes = [16, 128], strides = [1, 1]} : vector<32x128xf32> to vector<16x128xf32>
    %29 = vector.extract_strided_slice %15 {offsets = [32, 0], sizes = [16, 128], strides = [1, 1]} : vector<48x128xf32> to vector<16x128xf32>
    %30 = vector.extract_strided_slice %16 {offsets = [32, 0], sizes = [16, 128], strides = [1, 1]} : vector<48x128xf32> to vector<16x128xf32>
    %31 = vector.broadcast %3 : vector<16x1xf32> to vector<16x128xf32>
    %32 = arith.addf %30, %31 : vector<16x128xf32>
    %33 = arith.mulf %27, %32 : vector<16x128xf32>
    %34 = arith.addf %29, %33 : vector<16x128xf32>
    %35 = math.tanh %34 : vector<16x128xf32>
    %36 = arith.subf %4, %35 : vector<16x128xf32>
    %37 = arith.mulf %28, %36 : vector<16x128xf32>
    %38 = arith.addf %35, %37 : vector<16x128xf32>
    %39 = vector.extract_strided_slice %13 {offsets = [1, 0, 0], sizes = [1, 48, 128], strides = [1, 1, 1]} : vector<8x48x128xf32> to vector<1x48x128xf32>
    %40 = vector.shape_cast %39 : vector<1x48x128xf32> to vector<48x128xf32>
    %cst_13 = arith.constant dense<0.000000e+00> : vector<48x128xf32>
    %41 = tpu.matmul %0, %38, %cst_13 {dimension_numbers = #tpu.dot_dimension_numbers<[1], [0], [0], [1], [0, 0, 1, 1], [], []>} : vector<48x16xf32>, vector<16x128xf32>, vector<48x128xf32> -> vector<48x128xf32>
    %42 = vector.extract_strided_slice %40 {offsets = [0, 0], sizes = [32, 128], strides = [1, 1]} : vector<48x128xf32> to vector<32x128xf32>
    %43 = vector.extract_strided_slice %41 {offsets = [0, 0], sizes = [32, 128], strides = [1, 1]} : vector<48x128xf32> to vector<32x128xf32>
    %44 = arith.addf %42, %43 : vector<32x128xf32>
    %cst_14 = arith.constant 5.000000e-01 : f32
    %45 = vector.broadcast %cst_14 : f32 to vector<32x128xf32>
    %46 = arith.mulf %45, %44 : vector<32x128xf32>
    %47 = math.tanh %46 : vector<32x128xf32>
    %cst_15 = arith.constant 5.000000e-01 : f32
    %48 = vector.broadcast %cst_15 : f32 to vector<32x128xf32>
    %49 = arith.mulf %48, %47 : vector<32x128xf32>
    %cst_16 = arith.constant 5.000000e-01 : f32
    %50 = vector.broadcast %cst_16 : f32 to vector<32x128xf32>
    %51 = arith.addf %49, %50 : vector<32x128xf32>
    %52 = vector.extract_strided_slice %51 {offsets = [0, 0], sizes = [16, 128], strides = [1, 1]} : vector<32x128xf32> to vector<16x128xf32>
    %53 = vector.extract_strided_slice %51 {offsets = [16, 0], sizes = [16, 128], strides = [1, 1]} : vector<32x128xf32> to vector<16x128xf32>
    %54 = vector.extract_strided_slice %40 {offsets = [32, 0], sizes = [16, 128], strides = [1, 1]} : vector<48x128xf32> to vector<16x128xf32>
    %55 = vector.extract_strided_slice %41 {offsets = [32, 0], sizes = [16, 128], strides = [1, 1]} : vector<48x128xf32> to vector<16x128xf32>
    %56 = vector.broadcast %3 : vector<16x1xf32> to vector<16x128xf32>
    %57 = arith.addf %55, %56 : vector<16x128xf32>
    %58 = arith.mulf %52, %57 : vector<16x128xf32>
    %59 = arith.addf %54, %58 : vector<16x128xf32>
    %60 = math.tanh %59 : vector<16x128xf32>
    %61 = arith.subf %38, %60 : vector<16x128xf32>
    %62 = arith.mulf %53, %61 : vector<16x128xf32>
    %63 = arith.addf %60, %62 : vector<16x128xf32>
    %64 = vector.extract_strided_slice %13 {offsets = [2, 0, 0], sizes = [1, 48, 128], strides = [1, 1, 1]} : vector<8x48x128xf32> to vector<1x48x128xf32>
    %65 = vector.shape_cast %64 : vector<1x48x128xf32> to vector<48x128xf32>
    %cst_17 = arith.constant dense<0.000000e+00> : vector<48x128xf32>
    %66 = tpu.matmul %0, %63, %cst_17 {dimension_numbers = #tpu.dot_dimension_numbers<[1], [0], [0], [1], [0, 0, 1, 1], [], []>} : vector<48x16xf32>, vector<16x128xf32>, vector<48x128xf32> -> vector<48x128xf32>
    %67 = vector.extract_strided_slice %65 {offsets = [0, 0], sizes = [32, 128], strides = [1, 1]} : vector<48x128xf32> to vector<32x128xf32>
    %68 = vector.extract_strided_slice %66 {offsets = [0, 0], sizes = [32, 128], strides = [1, 1]} : vector<48x128xf32> to vector<32x128xf32>
    %69 = arith.addf %67, %68 : vector<32x128xf32>
    %cst_18 = arith.constant 5.000000e-01 : f32
    %70 = vector.broadcast %cst_18 : f32 to vector<32x128xf32>
    %71 = arith.mulf %70, %69 : vector<32x128xf32>
    %72 = math.tanh %71 : vector<32x128xf32>
    %cst_19 = arith.constant 5.000000e-01 : f32
    %73 = vector.broadcast %cst_19 : f32 to vector<32x128xf32>
    %74 = arith.mulf %73, %72 : vector<32x128xf32>
    %cst_20 = arith.constant 5.000000e-01 : f32
    %75 = vector.broadcast %cst_20 : f32 to vector<32x128xf32>
    %76 = arith.addf %74, %75 : vector<32x128xf32>
    %77 = vector.extract_strided_slice %76 {offsets = [0, 0], sizes = [16, 128], strides = [1, 1]} : vector<32x128xf32> to vector<16x128xf32>
    %78 = vector.extract_strided_slice %76 {offsets = [16, 0], sizes = [16, 128], strides = [1, 1]} : vector<32x128xf32> to vector<16x128xf32>
    %79 = vector.extract_strided_slice %65 {offsets = [32, 0], sizes = [16, 128], strides = [1, 1]} : vector<48x128xf32> to vector<16x128xf32>
    %80 = vector.extract_strided_slice %66 {offsets = [32, 0], sizes = [16, 128], strides = [1, 1]} : vector<48x128xf32> to vector<16x128xf32>
    %81 = vector.broadcast %3 : vector<16x1xf32> to vector<16x128xf32>
    %82 = arith.addf %80, %81 : vector<16x128xf32>
    %83 = arith.mulf %77, %82 : vector<16x128xf32>
    %84 = arith.addf %79, %83 : vector<16x128xf32>
    %85 = math.tanh %84 : vector<16x128xf32>
    %86 = arith.subf %63, %85 : vector<16x128xf32>
    %87 = arith.mulf %78, %86 : vector<16x128xf32>
    %88 = arith.addf %85, %87 : vector<16x128xf32>
    %89 = vector.extract_strided_slice %13 {offsets = [3, 0, 0], sizes = [1, 48, 128], strides = [1, 1, 1]} : vector<8x48x128xf32> to vector<1x48x128xf32>
    %90 = vector.shape_cast %89 : vector<1x48x128xf32> to vector<48x128xf32>
    %cst_21 = arith.constant dense<0.000000e+00> : vector<48x128xf32>
    %91 = tpu.matmul %0, %88, %cst_21 {dimension_numbers = #tpu.dot_dimension_numbers<[1], [0], [0], [1], [0, 0, 1, 1], [], []>} : vector<48x16xf32>, vector<16x128xf32>, vector<48x128xf32> -> vector<48x128xf32>
    %92 = vector.extract_strided_slice %90 {offsets = [0, 0], sizes = [32, 128], strides = [1, 1]} : vector<48x128xf32> to vector<32x128xf32>
    %93 = vector.extract_strided_slice %91 {offsets = [0, 0], sizes = [32, 128], strides = [1, 1]} : vector<48x128xf32> to vector<32x128xf32>
    %94 = arith.addf %92, %93 : vector<32x128xf32>
    %cst_22 = arith.constant 5.000000e-01 : f32
    %95 = vector.broadcast %cst_22 : f32 to vector<32x128xf32>
    %96 = arith.mulf %95, %94 : vector<32x128xf32>
    %97 = math.tanh %96 : vector<32x128xf32>
    %cst_23 = arith.constant 5.000000e-01 : f32
    %98 = vector.broadcast %cst_23 : f32 to vector<32x128xf32>
    %99 = arith.mulf %98, %97 : vector<32x128xf32>
    %cst_24 = arith.constant 5.000000e-01 : f32
    %100 = vector.broadcast %cst_24 : f32 to vector<32x128xf32>
    %101 = arith.addf %99, %100 : vector<32x128xf32>
    %102 = vector.extract_strided_slice %101 {offsets = [0, 0], sizes = [16, 128], strides = [1, 1]} : vector<32x128xf32> to vector<16x128xf32>
    %103 = vector.extract_strided_slice %101 {offsets = [16, 0], sizes = [16, 128], strides = [1, 1]} : vector<32x128xf32> to vector<16x128xf32>
    %104 = vector.extract_strided_slice %90 {offsets = [32, 0], sizes = [16, 128], strides = [1, 1]} : vector<48x128xf32> to vector<16x128xf32>
    %105 = vector.extract_strided_slice %91 {offsets = [32, 0], sizes = [16, 128], strides = [1, 1]} : vector<48x128xf32> to vector<16x128xf32>
    %106 = vector.broadcast %3 : vector<16x1xf32> to vector<16x128xf32>
    %107 = arith.addf %105, %106 : vector<16x128xf32>
    %108 = arith.mulf %102, %107 : vector<16x128xf32>
    %109 = arith.addf %104, %108 : vector<16x128xf32>
    %110 = math.tanh %109 : vector<16x128xf32>
    %111 = arith.subf %88, %110 : vector<16x128xf32>
    %112 = arith.mulf %103, %111 : vector<16x128xf32>
    %113 = arith.addf %110, %112 : vector<16x128xf32>
    %114 = vector.extract_strided_slice %13 {offsets = [4, 0, 0], sizes = [1, 48, 128], strides = [1, 1, 1]} : vector<8x48x128xf32> to vector<1x48x128xf32>
    %115 = vector.shape_cast %114 : vector<1x48x128xf32> to vector<48x128xf32>
    %cst_25 = arith.constant dense<0.000000e+00> : vector<48x128xf32>
    %116 = tpu.matmul %0, %113, %cst_25 {dimension_numbers = #tpu.dot_dimension_numbers<[1], [0], [0], [1], [0, 0, 1, 1], [], []>} : vector<48x16xf32>, vector<16x128xf32>, vector<48x128xf32> -> vector<48x128xf32>
    %117 = vector.extract_strided_slice %115 {offsets = [0, 0], sizes = [32, 128], strides = [1, 1]} : vector<48x128xf32> to vector<32x128xf32>
    %118 = vector.extract_strided_slice %116 {offsets = [0, 0], sizes = [32, 128], strides = [1, 1]} : vector<48x128xf32> to vector<32x128xf32>
    %119 = arith.addf %117, %118 : vector<32x128xf32>
    %cst_26 = arith.constant 5.000000e-01 : f32
    %120 = vector.broadcast %cst_26 : f32 to vector<32x128xf32>
    %121 = arith.mulf %120, %119 : vector<32x128xf32>
    %122 = math.tanh %121 : vector<32x128xf32>
    %cst_27 = arith.constant 5.000000e-01 : f32
    %123 = vector.broadcast %cst_27 : f32 to vector<32x128xf32>
    %124 = arith.mulf %123, %122 : vector<32x128xf32>
    %cst_28 = arith.constant 5.000000e-01 : f32
    %125 = vector.broadcast %cst_28 : f32 to vector<32x128xf32>
    %126 = arith.addf %124, %125 : vector<32x128xf32>
    %127 = vector.extract_strided_slice %126 {offsets = [0, 0], sizes = [16, 128], strides = [1, 1]} : vector<32x128xf32> to vector<16x128xf32>
    %128 = vector.extract_strided_slice %126 {offsets = [16, 0], sizes = [16, 128], strides = [1, 1]} : vector<32x128xf32> to vector<16x128xf32>
    %129 = vector.extract_strided_slice %115 {offsets = [32, 0], sizes = [16, 128], strides = [1, 1]} : vector<48x128xf32> to vector<16x128xf32>
    %130 = vector.extract_strided_slice %116 {offsets = [32, 0], sizes = [16, 128], strides = [1, 1]} : vector<48x128xf32> to vector<16x128xf32>
    %131 = vector.broadcast %3 : vector<16x1xf32> to vector<16x128xf32>
    %132 = arith.addf %130, %131 : vector<16x128xf32>
    %133 = arith.mulf %127, %132 : vector<16x128xf32>
    %134 = arith.addf %129, %133 : vector<16x128xf32>
    %135 = math.tanh %134 : vector<16x128xf32>
    %136 = arith.subf %113, %135 : vector<16x128xf32>
    %137 = arith.mulf %128, %136 : vector<16x128xf32>
    %138 = arith.addf %135, %137 : vector<16x128xf32>
    %139 = vector.extract_strided_slice %13 {offsets = [5, 0, 0], sizes = [1, 48, 128], strides = [1, 1, 1]} : vector<8x48x128xf32> to vector<1x48x128xf32>
    %140 = vector.shape_cast %139 : vector<1x48x128xf32> to vector<48x128xf32>
    %cst_29 = arith.constant dense<0.000000e+00> : vector<48x128xf32>
    %141 = tpu.matmul %0, %138, %cst_29 {dimension_numbers = #tpu.dot_dimension_numbers<[1], [0], [0], [1], [0, 0, 1, 1], [], []>} : vector<48x16xf32>, vector<16x128xf32>, vector<48x128xf32> -> vector<48x128xf32>
    %142 = vector.extract_strided_slice %140 {offsets = [0, 0], sizes = [32, 128], strides = [1, 1]} : vector<48x128xf32> to vector<32x128xf32>
    %143 = vector.extract_strided_slice %141 {offsets = [0, 0], sizes = [32, 128], strides = [1, 1]} : vector<48x128xf32> to vector<32x128xf32>
    %144 = arith.addf %142, %143 : vector<32x128xf32>
    %cst_30 = arith.constant 5.000000e-01 : f32
    %145 = vector.broadcast %cst_30 : f32 to vector<32x128xf32>
    %146 = arith.mulf %145, %144 : vector<32x128xf32>
    %147 = math.tanh %146 : vector<32x128xf32>
    %cst_31 = arith.constant 5.000000e-01 : f32
    %148 = vector.broadcast %cst_31 : f32 to vector<32x128xf32>
    %149 = arith.mulf %148, %147 : vector<32x128xf32>
    %cst_32 = arith.constant 5.000000e-01 : f32
    %150 = vector.broadcast %cst_32 : f32 to vector<32x128xf32>
    %151 = arith.addf %149, %150 : vector<32x128xf32>
    %152 = vector.extract_strided_slice %151 {offsets = [0, 0], sizes = [16, 128], strides = [1, 1]} : vector<32x128xf32> to vector<16x128xf32>
    %153 = vector.extract_strided_slice %151 {offsets = [16, 0], sizes = [16, 128], strides = [1, 1]} : vector<32x128xf32> to vector<16x128xf32>
    %154 = vector.extract_strided_slice %140 {offsets = [32, 0], sizes = [16, 128], strides = [1, 1]} : vector<48x128xf32> to vector<16x128xf32>
    %155 = vector.extract_strided_slice %141 {offsets = [32, 0], sizes = [16, 128], strides = [1, 1]} : vector<48x128xf32> to vector<16x128xf32>
    %156 = vector.broadcast %3 : vector<16x1xf32> to vector<16x128xf32>
    %157 = arith.addf %155, %156 : vector<16x128xf32>
    %158 = arith.mulf %152, %157 : vector<16x128xf32>
    %159 = arith.addf %154, %158 : vector<16x128xf32>
    %160 = math.tanh %159 : vector<16x128xf32>
    %161 = arith.subf %138, %160 : vector<16x128xf32>
    %162 = arith.mulf %153, %161 : vector<16x128xf32>
    %163 = arith.addf %160, %162 : vector<16x128xf32>
    %164 = vector.extract_strided_slice %13 {offsets = [6, 0, 0], sizes = [1, 48, 128], strides = [1, 1, 1]} : vector<8x48x128xf32> to vector<1x48x128xf32>
    %165 = vector.shape_cast %164 : vector<1x48x128xf32> to vector<48x128xf32>
    %cst_33 = arith.constant dense<0.000000e+00> : vector<48x128xf32>
    %166 = tpu.matmul %0, %163, %cst_33 {dimension_numbers = #tpu.dot_dimension_numbers<[1], [0], [0], [1], [0, 0, 1, 1], [], []>} : vector<48x16xf32>, vector<16x128xf32>, vector<48x128xf32> -> vector<48x128xf32>
    %167 = vector.extract_strided_slice %165 {offsets = [0, 0], sizes = [32, 128], strides = [1, 1]} : vector<48x128xf32> to vector<32x128xf32>
    %168 = vector.extract_strided_slice %166 {offsets = [0, 0], sizes = [32, 128], strides = [1, 1]} : vector<48x128xf32> to vector<32x128xf32>
    %169 = arith.addf %167, %168 : vector<32x128xf32>
    %cst_34 = arith.constant 5.000000e-01 : f32
    %170 = vector.broadcast %cst_34 : f32 to vector<32x128xf32>
    %171 = arith.mulf %170, %169 : vector<32x128xf32>
    %172 = math.tanh %171 : vector<32x128xf32>
    %cst_35 = arith.constant 5.000000e-01 : f32
    %173 = vector.broadcast %cst_35 : f32 to vector<32x128xf32>
    %174 = arith.mulf %173, %172 : vector<32x128xf32>
    %cst_36 = arith.constant 5.000000e-01 : f32
    %175 = vector.broadcast %cst_36 : f32 to vector<32x128xf32>
    %176 = arith.addf %174, %175 : vector<32x128xf32>
    %177 = vector.extract_strided_slice %176 {offsets = [0, 0], sizes = [16, 128], strides = [1, 1]} : vector<32x128xf32> to vector<16x128xf32>
    %178 = vector.extract_strided_slice %176 {offsets = [16, 0], sizes = [16, 128], strides = [1, 1]} : vector<32x128xf32> to vector<16x128xf32>
    %179 = vector.extract_strided_slice %165 {offsets = [32, 0], sizes = [16, 128], strides = [1, 1]} : vector<48x128xf32> to vector<16x128xf32>
    %180 = vector.extract_strided_slice %166 {offsets = [32, 0], sizes = [16, 128], strides = [1, 1]} : vector<48x128xf32> to vector<16x128xf32>
    %181 = vector.broadcast %3 : vector<16x1xf32> to vector<16x128xf32>
    %182 = arith.addf %180, %181 : vector<16x128xf32>
    %183 = arith.mulf %177, %182 : vector<16x128xf32>
    %184 = arith.addf %179, %183 : vector<16x128xf32>
    %185 = math.tanh %184 : vector<16x128xf32>
    %186 = arith.subf %163, %185 : vector<16x128xf32>
    %187 = arith.mulf %178, %186 : vector<16x128xf32>
    %188 = arith.addf %185, %187 : vector<16x128xf32>
    %189 = vector.extract_strided_slice %13 {offsets = [7, 0, 0], sizes = [1, 48, 128], strides = [1, 1, 1]} : vector<8x48x128xf32> to vector<1x48x128xf32>
    %190 = vector.shape_cast %189 : vector<1x48x128xf32> to vector<48x128xf32>
    %cst_37 = arith.constant dense<0.000000e+00> : vector<48x128xf32>
    %191 = tpu.matmul %0, %188, %cst_37 {dimension_numbers = #tpu.dot_dimension_numbers<[1], [0], [0], [1], [0, 0, 1, 1], [], []>} : vector<48x16xf32>, vector<16x128xf32>, vector<48x128xf32> -> vector<48x128xf32>
    %192 = vector.extract_strided_slice %190 {offsets = [0, 0], sizes = [32, 128], strides = [1, 1]} : vector<48x128xf32> to vector<32x128xf32>
    %193 = vector.extract_strided_slice %191 {offsets = [0, 0], sizes = [32, 128], strides = [1, 1]} : vector<48x128xf32> to vector<32x128xf32>
    %194 = arith.addf %192, %193 : vector<32x128xf32>
    %cst_38 = arith.constant 5.000000e-01 : f32
    %195 = vector.broadcast %cst_38 : f32 to vector<32x128xf32>
    %196 = arith.mulf %195, %194 : vector<32x128xf32>
    %197 = math.tanh %196 : vector<32x128xf32>
    %cst_39 = arith.constant 5.000000e-01 : f32
    %198 = vector.broadcast %cst_39 : f32 to vector<32x128xf32>
    %199 = arith.mulf %198, %197 : vector<32x128xf32>
    %cst_40 = arith.constant 5.000000e-01 : f32
    %200 = vector.broadcast %cst_40 : f32 to vector<32x128xf32>
    %201 = arith.addf %199, %200 : vector<32x128xf32>
    %202 = vector.extract_strided_slice %201 {offsets = [0, 0], sizes = [16, 128], strides = [1, 1]} : vector<32x128xf32> to vector<16x128xf32>
    %203 = vector.extract_strided_slice %201 {offsets = [16, 0], sizes = [16, 128], strides = [1, 1]} : vector<32x128xf32> to vector<16x128xf32>
    %204 = vector.extract_strided_slice %190 {offsets = [32, 0], sizes = [16, 128], strides = [1, 1]} : vector<48x128xf32> to vector<16x128xf32>
    %205 = vector.extract_strided_slice %191 {offsets = [32, 0], sizes = [16, 128], strides = [1, 1]} : vector<48x128xf32> to vector<16x128xf32>
    %206 = vector.broadcast %3 : vector<16x1xf32> to vector<16x128xf32>
    %207 = arith.addf %205, %206 : vector<16x128xf32>
    %208 = arith.mulf %202, %207 : vector<16x128xf32>
    %209 = arith.addf %204, %208 : vector<16x128xf32>
    %210 = math.tanh %209 : vector<16x128xf32>
    %211 = arith.subf %188, %210 : vector<16x128xf32>
    %212 = arith.mulf %203, %211 : vector<16x128xf32>
    %213 = arith.addf %210, %212 : vector<16x128xf32>
    %c0_41 = arith.constant 0 : index
    %c0_42 = arith.constant 0 : index
    %214 = vector.load %arg6[%c0_41, %c0_42] : memref<16x16xf32, #tpu.memory_space<vmem>>, vector<16x16xf32>
    %cst_43 = arith.constant dense<0.000000e+00> : vector<16x128xf32>
    %215 = tpu.matmul %214, %213, %cst_43 {dimension_numbers = #tpu.dot_dimension_numbers<[1], [0], [0], [1], [0, 0, 1, 1], [], []>} : vector<16x16xf32>, vector<16x128xf32>, vector<16x128xf32> -> vector<16x128xf32>
    %c0_44 = arith.constant 0 : index
    %c0_45 = arith.constant 0 : index
    %216 = vector.load %arg7[%c0_44, %c0_45] : memref<16x1xf32, #tpu.memory_space<vmem>>, vector<16x1xf32>
    %217 = vector.broadcast %216 : vector<16x1xf32> to vector<16x128xf32>
    %218 = arith.addf %215, %217 : vector<16x128xf32>
    %c0_46 = arith.constant 0 : index
    %c0_47 = arith.constant 0 : index
    %219 = vector.load %arg8[%c0_46, %c0_47] : memref<16x128xf32, #tpu.memory_space<vmem>>, vector<16x128xf32>
    tpu.vector_store %arg8[%c0_46, %c0_47], %218 {strides = array<i32>} : memref<16x128xf32, #tpu.memory_space<vmem>>, vector<16x128xf32>,
    return
  }
  func.func @transform_0(%arg0: i32) -> (i32, i32) {
    %c0_i32 = arith.constant 0 : i32
    %c0_i32_0 = arith.constant 0 : i32
    return %c0_i32, %arg0 : i32, i32
  }
  func.func @transform_1(%arg0: i32) -> (i32, i32) {
    %c0_i32 = arith.constant 0 : i32
    %c0_i32_0 = arith.constant 0 : i32
    %c0_i32_1 = arith.constant 0 : i32
    return %c0_i32, %c0_i32_0 : i32, i32
  }
  func.func @transform_2(%arg0: i32) -> (i32, i32) {
    %c0_i32 = arith.constant 0 : i32
    %c0_i32_0 = arith.constant 0 : i32
    %c0_i32_1 = arith.constant 0 : i32
    return %c0_i32, %c0_i32_0 : i32, i32
  }
  func.func @transform_3(%arg0: i32) -> (i32, i32) {
    %c0_i32 = arith.constant 0 : i32
    %c0_i32_0 = arith.constant 0 : i32
    %c0_i32_1 = arith.constant 0 : i32
    return %c0_i32, %c0_i32_0 : i32, i32
  }
  func.func @transform_4(%arg0: i32) -> (i32, i32) {
    %c0_i32 = arith.constant 0 : i32
    %c0_i32_0 = arith.constant 0 : i32
    %c0_i32_1 = arith.constant 0 : i32
    return %c0_i32, %c0_i32_0 : i32, i32
  }
  func.func @transform_5(%arg0: i32) -> (i32, i32) {
    %c0_i32 = arith.constant 0 : i32
    %c0_i32_0 = arith.constant 0 : i32
    %c0_i32_1 = arith.constant 0 : i32
    return %c0_i32, %c0_i32_0 : i32, i32
  }
  func.func @transform_6(%arg0: i32) -> (i32, i32) {
    %c0_i32 = arith.constant 0 : i32
    %c0_i32_0 = arith.constant 0 : i32
    %c0_i32_1 = arith.constant 0 : i32
    return %c0_i32, %c0_i32_0 : i32, i32
  }
  func.func @transform_7(%arg0: i32) -> (i32, i32) {
    %c0_i32 = arith.constant 0 : i32
    %c0_i32_0 = arith.constant 0 : i32
    return %c0_i32, %arg0 : i32, i32
  }
}

</mosaic_0001>

<bundles_post_ra>
// kernel: tpu_custom_call.1
= control target key start
LH: loop header
LB: loop body
LE: loop exit
PB: predicated region body
PF: predicated region fallthrough
CT: control target
= control target key end

     0   :  { %vm294_vm0 = vcmask 130048   ;;  %v1860_v2 = vmov 0.0   ;;  %v1861_v4 = vmov 0   ;;  %s2419_s0 = inlined_call_operand.vmem [shape: f32[8,128], index: 0, kind: input, shape index: {}]   ;;  %s2420_s1 = inlined_call_operand.vmem [shape: f32[48,1], index: 1, kind: input, shape index: {}]   ;;  %s2421_s2 = inlined_call_operand.vmem [shape: f32[48,1], index: 2, kind: input, shape index: {}]   ;;  %s2422_s3 = inlined_call_operand.vmem [shape: f32[16,1], index: 3, kind: input, shape index: {}]   ;;  %s2423_s4 = inlined_call_operand.vmem [shape: f32[48,16], index: 4, kind: input, shape index: {}]   ;;  %s2424_s5 = inlined_call_operand.vmem [shape: f32[16,16], index: 5, kind: input, shape index: {}]   ;;  %s2425_s6 = inlined_call_operand.vmem [shape: f32[16,1], index: 6, kind: input, shape index: {}]   ;;  %s2426_s7 = inlined_call_operand.hbm [shape: f32[16,128], index: 7, kind: output, shape index: {}]  }
   0x1   :  { %v1909_v0 = vld [vmem:[%s2423_s4] sm:$0xff]  ;;  %v1914_v1 = vld [vmem:[%s2423_s4 + $0x8] sm:$0xff]  ;;  %1585 = vmatprep.subr.mxu0 %v1860_v2  ;;  %v1921_v3 = vld [vmem:[%s2423_s4 + $0x10] sm:$0xff]  ;;  %1732 = vset.pattern.permute.xlu0 %v1861_v4 }
   0x2   :  { %1587 = vmatprep.mubr.msk.f32.mxu0 %vm294_vm0, %v1909_v0  ;;  %1586 = vmatpush3.msra.mxu0 %v1860_v2  ;;  %v33_v5 = vld [vmem:[%s2420_s1] sm:$0xff]  ;;  %v1936_v7 = vld [vmem:[%s2423_s4 + $0x18] sm:$0xff]  ;;  %v34_v8 = vld [vmem:[%s2420_s1 + $0x8] sm:$0xff] }
   0x3   :  { %v39_v6 = vld [vmem:[%s2421_s2] sm:$0xff]  ;;  %1588 = vmatmul.mubr.msk.f32.vlgmr.msra.gmra.mrb[0].mxu0 %vm294_vm0, %v1914_v1  ;;  %140 = vperm.xlu0 %1732, %v33_v5   ;;  %v40_v10 = vld [vmem:[%s2421_s2 + $0x8] sm:$0xff] }
   0x4   :  { %1590 = vmatprep.mubr.msk.f32.mxu0 %vm294_vm0, %v1921_v3  ;;  %1733 = vset.pattern.permute.xlu1 %v1861_v4  ;;  %v1944_v9 = vld [vmem:[%s2423_s4 + $0x20] sm:$0xff] }
   0x5   :  { %218 = vperm.xlu1 %1733, %v39_v6   ;;  %1600 = vmatprep.mubr.msk.f32.mxu1 %vm294_vm0, %v1909_v0 }
   0x7   :  { %1591 = vmatmul.mubr.msk.f32.gmra.mrb[2].mxu0 %vm294_vm0, %v1936_v7  ;;  %145 = vperm.xlu0 %1732, %v34_v8  }
   0x8   :  { %12 = vsyncpa [#allocation3], 0  ;;  %1593 = vmatprep.mubr.msk.f32.mxu0 %vm294_vm0, %v1944_v9  ;;  %v1958_v11 = vld [vmem:[%s2423_s4 + $0x28] sm:$0xff]  ;;  %v35_v12 = vld [vmem:[%s2420_s1 + $0x10] sm:$0xff]  ;;  %v1862_v24 = vmov 1966171168   ;;  %v53_v26 = vlaneseq }
   0x9   :  { %223 = vperm.xlu1 %1733, %v40_v10   ;;  %v36_v13 = vld [vmem:[%s2420_s1 + $0x18] sm:$0xff]  ;;  %v41_v14 = vld [vmem:[%s2421_s2 + $0x10] sm:$0xff]  ;;  %v37_v16 = vld [vmem:[%s2420_s1 + $0x20] sm:$0xff]  ;;  %v51_v25 = vunpack.c.l.s4 %v1862_v24  ;;  %s1863_s9 = smov [#allocation2]  }
   0xa   :  { %v42_v15 = vld [vmem:[%s2421_s2 + $0x18] sm:$0xff]  ;;  %v38_v17 = vld [vmem:[%s2420_s1 + $0x28] sm:$0xff]  ;;  %v45_v18 = vld [vmem:[%s2422_s3] sm:$0xff]  ;;  %v54_v28 = vshrl.u32 %v53_v26, 7  ;;  %s1457_s10 = sshll.u32 %s1863_s9, 4  ;;  %s1458_s10 = int_to_ptr.vmem [resolvable:$true] %s1457_s10 }
   0xb   :  { %1594 = vmatmul.mubr.msk.f32.gmra.mrb[4].mxu0 %vm294_vm0, %v1958_v11  ;;  %150 = vperm.xlu0 %1732, %v35_v12   ;;  %v46_v19 = vld [vmem:[%s2422_s3 + $0x8] sm:$0xff]  ;;  %v43_v20 = vld [vmem:[%s2421_s2 + $0x20] sm:$0xff]  ;;  %v52_v27 = vunpack.c.0.s8 %v51_v25  ;;  %s1836_s11 = scalar_lea.vmem %s1458_s10, 256  ;;  %p1841_p1 = scmp.lt.s32.totalorder %s1458_s10, %s1458_s10 }
   0xc   :  { %1613 = vmatprep.mubr.msk.f32.mxu0 %vm294_vm0, %v1909_v0  ;;  %v44_v21 = vld [vmem:[%s2421_s2 + $0x28] sm:$0xff]  ;;  %v1357_v22 = vld [vmem:[%s2425_s6] sm:$0xff]  ;;  %v2005_v37 = vsub.s32 0, %v54_v28  ;;  %p1837_p0 = scmp.ne.s32.totalorder %s1458_s10, %s1836_s11  ;;  %p1842_p2 = scmp.lt.s32.totalorder %s1836_s11, %s1836_s11 }
   0xd   :  { %155 = vperm.xlu1 %1733, %v36_v13   ;;  %v1358_v23 = vld [vmem:[%s2425_s6 + $0x8] sm:$0xff]  ;;  %v55_v29 = vsub.s32 %v52_v27, %v54_v28  ;;  %v47_v30 = vld [vmem:[%s2419_s0] sm:$0xff] }
   0xe   :  { %v49_v32 = vcombine.high %v47_v30, %v47_v30  ;;  %p1843_p3 = por %p1842_p2, %p1841_p1 }
   0xf   :  { %228 = vperm.xlu0 %1732, %v41_v14   ;;  %v56_v31 = vrot.slane %v47_v30, %v55_v29 }
  0x10   :  { %v63_v33 = vrot.slane %v49_v32, %v55_v29  ;;  %p1844_p4 = pnand %p1843_p3, %p1837_p0 }
  0x11   :  { %233 = vperm.xlu1 %1733, %v42_v15   ;;  %v2003_v34 = vrot.slane %v56_v31, %v55_v29  ;;  %v64_v35 = vcombine.high %v56_v31, %v56_v31 }
  0x12   :  { %v65_v36 = vcombine.high %v63_v33, %v63_v33  ;;  %v79_v39 = vrot.slane %v63_v33, %v55_v29 }
  0x13   :  { %160 = vperm.xlu0 %1732, %v37_v16   ;;  %v86_v38 = vrot.slane %v64_v35, %v55_v29  ;;  %v94_v41 = vcombine.high %v2003_v34, %v2003_v34 }
  0x14   :  { %v93_v40 = vrot.slane %v65_v36, %v55_v29  ;;  %v95_v43 = vcombine.high %v79_v39, %v79_v39  ;;  %v2019_v48 = vrot.slane %v79_v39, %v2005_v37 }
  0x15   :  { %165 = vperm.xlu1 %1733, %v38_v17   ;;  %v96_v42 = vcombine.high %v86_v38, %v86_v38  ;;  %v2010_v45 = vrot.slane %v86_v38, %v2005_v37  ;;  %v2013_v46 = vrot.slane %v94_v41, %v2005_v37 }
  0x16   :  { %v97_v44 = vcombine.high %v93_v40, %v93_v40  ;;  %v2022_v49 = vrot.slane %v93_v40, %v2005_v37  ;;  %v2025_v50 = vrot.slane %v95_v43, %v2005_v37 }
  0x17   :  { %430 = vperm.xlu0 %1732, %v45_v18   ;;  %v2016_v47 = vrot.slane %v96_v42, %v2005_v37 }
  0x18   :  { %v2028_v51 = vrot.slane %v97_v44, %v2005_v37 }
  0x19   :  { %435 = vperm.xlu1 %1733, %v46_v19  }
  0x1b   :  { %238 = vperm.xlu0 %1732, %v43_v20  }
  0x1d   :  { %243 = vperm.xlu1 %1733, %v44_v21  }
  0x1f   :  { %1361 = vperm.xlu0 %1732, %v1357_v22  }
  0x21   :  { %1366 = vperm.xlu1 %1733, %v1358_v23  }
  0x82   :  { %v2030_v52 = vpop.permute.xlu0 %140 }
  0x83   :  { %v174_v53 = vmul.f32 %v2030_v52, %v2010_v45  ;;  %v180_v54 = vmul.f32 %v2030_v52, %v2013_v46  ;;  %v186_v55 = vmul.f32 %v2030_v52, %v2016_v47  ;;  %v192_v57 = vmul.f32 %v2030_v52, %v2019_v48 }
  0x84   :  { %v2038_v56 = vpop.permute.xlu1 %218  ;;  %v198_v58 = vmul.f32 %v2030_v52, %v2022_v49  ;;  %v204_v59 = vmul.f32 %v2030_v52, %v2025_v50  ;;  %v210_v60 = vmul.f32 %v2030_v52, %v2028_v51 }
  0x85   :  { %v2049_v61 = vadd.f32 %v2038_v56, %v174_v53  ;;  %v2052_v62 = vadd.f32 %v2038_v56, %v180_v54  ;;  %v2055_v63 = vadd.f32 %v2038_v56, %v186_v55  ;;  %v2060_v4 = vadd.f32 %v2038_v56, %v192_v57 }
  0x86   :  { %v2057_v2 = vpop.permute.xlu0 %145  ;;  %v2063_v5 = vadd.f32 %v2038_v56, %v198_v58  ;;  %v2066_v6 = vadd.f32 %v2038_v56, %v204_v59  ;;  %v2069_v8 = vadd.f32 %v2038_v56, %v210_v60 }
  0x87   :  { %v175_v10 = vmul.f32 %v2057_v2, %v2010_v45  ;;  %v181_v12 = vmul.f32 %v2057_v2, %v2013_v46  ;;  %v187_v13 = vmul.f32 %v2057_v2, %v2016_v47  ;;  %v193_v15 = vmul.f32 %v2057_v2, %v2019_v48 }
  0x88   :  { %2427 = vst [vmem:[#allocation5_spill] sm:$0xff] %v2066_v6  ;;  %2428 = vst [vmem:[#allocation6_spill] sm:$0xff] %v2069_v8  ;;  %v2077_v14 = vpop.permute.xlu1 %223  ;;  %v199_v16 = vmul.f32 %v2057_v2, %v2022_v49  ;;  %v205_v17 = vmul.f32 %v2057_v2, %v2025_v50  ;;  %v211_v18 = vmul.f32 %v2057_v2, %v2028_v51 }
  0x89   :  { %v2088_v19 = vadd.f32 %v2077_v14, %v175_v10  ;;  %v2091_v20 = vadd.f32 %v2077_v14, %v181_v12  ;;  %v2094_v21 = vadd.f32 %v2077_v14, %v187_v13  ;;  %v2099_v23 = vadd.f32 %v2077_v14, %v193_v15 }
  0x8a   :  { %v2096_v22 = vpop.permute.xlu0 %150  ;;  %v2102_v24 = vadd.f32 %v2077_v14, %v199_v16  ;;  %v2105_v25 = vadd.f32 %v2077_v14, %v205_v17  ;;  %v2108_v26 = vadd.f32 %v2077_v14, %v211_v18 }
  0x8b   :  { %v176_v27 = vmul.f32 %v2096_v22, %v2010_v45  ;;  %v182_v28 = vmul.f32 %v2096_v22, %v2013_v46  ;;  %v188_v29 = vmul.f32 %v2096_v22, %v2016_v47  ;;  %v194_v31 = vmul.f32 %v2096_v22, %v2019_v48 }
  0x8c   :  { %2429 = vst [vmem:[#allocation7_spill] sm:$0xff] %v2105_v25  ;;  %2430 = vst [vmem:[#allocation8_spill] sm:$0xff] %v2108_v26  ;;  %v2116_v30 = vpop.permute.xlu1 %155  ;;  %v200_v32 = vmul.f32 %v2096_v22, %v2022_v49  ;;  %v206_v33 = vmul.f32 %v2096_v22, %v2025_v50  ;;  %v212_v35 = vmul.f32 %v2096_v22, %v2028_v51 }
  0x8d   :  { %v177_v36 = vmul.f32 %v2116_v30, %v2010_v45  ;;  %v183_v38 = vmul.f32 %v2116_v30, %v2013_v46  ;;  %v189_v39 = vmul.f32 %v2116_v30, %v2016_v47  ;;  %v195_v41 = vmul.f32 %v2116_v30, %v2019_v48 }
  0x8e   :  { %v2132_v40 = vpop.permute.xlu0 %228  ;;  %v201_v42 = vmul.f32 %v2116_v30, %v2022_v49  ;;  %v207_v43 = vmul.f32 %v2116_v30, %v2025_v50  ;;  %v213_v44 = vmul.f32 %v2116_v30, %v2028_v51 }
  0x8f   :  { %v2143_v53 = vadd.f32 %v2132_v40, %v176_v27  ;;  %v2146_v54 = vadd.f32 %v2132_v40, %v182_v28  ;;  %v2149_v55 = vadd.f32 %v2132_v40, %v188_v29  ;;  %v2154_v58 = vadd.f32 %v2132_v40, %v194_v31 }
  0x90   :  { %v2151_v57 = vpop.permute.xlu1 %233  ;;  %v2157_v59 = vadd.f32 %v2132_v40, %v200_v32  ;;  %v2160_v60 = vadd.f32 %v2132_v40, %v206_v33  ;;  %v2163_v10 = vadd.f32 %v2132_v40, %v212_v35 }
  0x91   :  { %v2166_v12 = vadd.f32 %v2151_v57, %v177_v36  ;;  %v2169_v13 = vadd.f32 %v2151_v57, %v183_v38  ;;  %v2172_v15 = vadd.f32 %v2151_v57, %v189_v39  ;;  %v2177_v17 = vadd.f32 %v2151_v57, %v195_v41 }
  0x92   :  { %2431 = vst [vmem:[#allocation9_spill] sm:$0xff] %v2157_v59  ;;  %2432 = vst [vmem:[#allocation10_spill] sm:$0xff] %v2160_v60  ;;  %v2174_v16 = vpop.permute.xlu0 %160  ;;  %v2180_v18 = vadd.f32 %v2151_v57, %v201_v42  ;;  %v2183_v27 = vadd.f32 %v2151_v57, %v207_v43  ;;  %v2186_v28 = vadd.f32 %v2151_v57, %v213_v44 }
  0x93   :  { %2433 = vst [vmem:[#allocation11_spill] sm:$0xff] %v2163_v10  ;;  %v178_v29 = vmul.f32 %v2174_v16, %v2010_v45  ;;  %v184_v31 = vmul.f32 %v2174_v16, %v2013_v46  ;;  %v190_v32 = vmul.f32 %v2174_v16, %v2016_v47  ;;  %v196_v35 = vmul.f32 %v2174_v16, %v2019_v48 }
  0x94   :  { %2434 = vst [vmem:[#allocation12_spill] sm:$0xff] %v2180_v18  ;;  %2435 = vst [vmem:[#allocation13_spill] sm:$0xff] %v2183_v27  ;;  %v166_v33 = vpop.permute.xlu1 %165  ;;  %v202_v36 = vmul.f32 %v2174_v16, %v2022_v49  ;;  %v208_v38 = vmul.f32 %v2174_v16, %v2025_v50  ;;  %v214_v39 = vmul.f32 %v2174_v16, %v2028_v51 }
  0x95   :  { %2436 = vst [vmem:[#allocation14_spill] sm:$0xff] %v2186_v28  ;;  %v179_v41 = vmul.f32 %v166_v33, %v2010_v45  ;;  %v185_v42 = vmul.f32 %v166_v33, %v2013_v46  ;;  %v191_v43 = vmul.f32 %v166_v33, %v2016_v47  ;;  %v197_v10 = vmul.f32 %v166_v33, %v2019_v48 }
  0x96   :  { %v2205_v44 = vpop.permute.xlu0 %430  ;;  %v203_v28 = vmul.f32 %v166_v33, %v2022_v49  ;;  %v209_v8 = vmul.f32 %v166_v33, %v2025_v50  ;;  %v215_v26 = vmul.f32 %v166_v33, %v2028_v51 }
  0x98   :  { %v2211_v60 = vpop.permute.xlu1 %435 }
  0x9a   :  { %v239_v27 = vpop.permute.xlu0 %238 }
  0x9b   :  { %v2213_v6 = vadd.f32 %v239_v27, %v178_v29  ;;  %v2215_v45 = vadd.f32 %v239_v27, %v184_v31  ;;  %v2217_v46 = vadd.f32 %v239_v27, %v190_v32  ;;  %v2219_v25 = vadd.f32 %v239_v27, %v196_v35 }
  0x9c   :  { %v244_v47 = vpop.permute.xlu1 %243  ;;  %v2221_v59 = vadd.f32 %v239_v27, %v202_v36  ;;  %v2223_v48 = vadd.f32 %v239_v27, %v208_v38  ;;  %v2225_v49 = vadd.f32 %v239_v27, %v214_v39  ;;  %v101_v36 = vrot.slane %v2003_v34, %v2005_v37 }
  0x9d   :  { %v2227_v50 = vadd.f32 %v244_v47, %v179_v41  ;;  %v2229_v51 = vadd.f32 %v244_v47, %v185_v42  ;;  %v2231_v18 = vadd.f32 %v244_v47, %v191_v43  ;;  %v2233_v29 = vadd.f32 %v244_v47, %v197_v10 }
  0x9e   :  { %2437 = vst [vmem:[#allocation15_spill] sm:$0xff] %v2223_v48  ;;  %2438 = vst [vmem:[#allocation16_spill] sm:$0xff] %v2225_v49  ;;  %v2235_v31 = vadd.f32 %v244_v47, %v203_v28  ;;  %v2237_v32 = vadd.f32 %v244_v47, %v209_v8  ;;  %v2239_v35 = vadd.f32 %v244_v47, %v215_v26 }
  0x9f   :  { %v169_v38 = vmul.f32 %v2057_v2, %v101_v36  ;;  %v168_v39 = vmul.f32 %v2030_v52, %v101_v36  ;;  %v171_v26 = vmul.f32 %v2116_v30, %v101_v36  ;;  %v170_v34 = vmul.f32 %v2096_v22, %v101_v36 }
  0xa0   :  { %2439 = vst [vmem:[#allocation17_spill] sm:$0xff] %v2239_v35  ;;  %v173_v30 = vmul.f32 %v166_v33, %v101_v36 }
  0xa1   :  { %v247_v41 = vadd.f32 %v2077_v14, %v169_v38  ;;  %v246_v43 = vadd.f32 %v2038_v56, %v168_v39  ;;  %v249_v52 = vadd.f32 %v2151_v57, %v171_v26  ;;  %v248_v14 = vadd.f32 %v2132_v40, %v170_v34 }
  0xa2   :  { %v251_v26 = vadd.f32 %v244_v47, %v173_v30 }
  0xd6   :  { %v1589_v42 = vpop.f32.mrb[0].mxu0 }
  0xd7   :  { %v409_v10 = vadd.f32 %v1589_v42, %v247_v41  ;;  %v379_v49 = vpop.f32.mrb[1].mxu0 }
  0xd8   :  { %v408_v28 = vadd.f32 %v379_v49, %v246_v43 }
  0xd9   :  { %v413_v48 = vmul.f32 0.5, %v409_v10 }
  0xda   :  { %v412_v8 = vmul.f32 0.5, %v408_v28  ;;  %v1592_v35 = vpop.f32.mrb[2].mxu0 }
  0xdb   :  { %1735 = vtanh.f32 %v413_v48  ;;  %v389_v37 = vpop.f32.mrb[3].mxu0  ;;  %v411_v56 = vadd.f32 %v1592_v35, %v249_v52  ;;  %v172_v48 = vmul.f32 %v2174_v16, %v101_v36 }
  0xdc   :  { %1737 = vtanh.f32 %v412_v8  ;;  %v410_v39 = vadd.f32 %v389_v37, %v248_v14 }
  0xdd   :  { %v415_v41 = vmul.f32 0.5, %v411_v56  ;;  %v250_v34 = vadd.f32 %v239_v27, %v172_v48 }
  0xde   :  { %v1595_v2 = vpop.f32.mrb[4].mxu0  ;;  %v414_v42 = vmul.f32 0.5, %v410_v39 }
  0xdf   :  { %v399_v38 = vpop.f32.mrb[5].mxu0  ;;  %1739 = vtanh.f32 %v415_v41  ;;  %v439_v8 = vadd.f32 %v1595_v2, %v2211_v60 }
  0xe0   :  { %1741 = vtanh.f32 %v414_v42  ;;  %v438_v40 = vadd.f32 %v2205_v44, %v399_v38 }
  0xe5   :  { %v1736_v49 = vpop.eup %1735 }
  0xe6   :  { %v1738_v43 = vpop.eup %1737  ;;  %v421_v10 = vmul.f32 0.5, %v1736_v49 }
  0xe7   :  { %v420_v28 = vmul.f32 0.5, %v1738_v43 }
  0xe8   :  { %v425_v22 = vadd.f32 0.5, %v421_v10 }
  0xe9   :  { %v424_v57 = vadd.f32 0.5, %v420_v28  ;;  %v1740_v33 = vpop.eup %1739 }
  0xea   :  { %v441_v35 = vmul.f32 %v439_v8, %v425_v22  ;;  %v1742_v56 = vpop.eup %1741  ;;  %v423_v39 = vmul.f32 0.5, %v1740_v33 }
  0xeb   :  { %v440_v37 = vmul.f32 %v438_v40, %v424_v57  ;;  %v422_v16 = vmul.f32 0.5, %v1742_v56 }
  0xec   :  { %v443_v52 = vadd.f32 %v441_v35, %v251_v26  ;;  %v427_v49 = vadd.f32 0.5, %v423_v39 }
  0xed   :  { %v442_v14 = vadd.f32 %v440_v37, %v250_v34  ;;  %v426_v42 = vadd.f32 0.5, %v422_v16 }
  0xee   :  { %1743 = vtanh.f32 %v443_v52 }
  0xef   :  { %1745 = vtanh.f32 %v442_v14 }
  0xf8   :  { %v1744_v36 = vpop.eup %1743 }
  0xf9   :  { %v1746_v41 = vpop.eup %1745  ;;  %v447_v2 = vsub.f32 0.0, %v1744_v36 }
  0xfa   :  { %v446_v43 = vsub.f32 0.0, %v1746_v41 }
  0xfb   :  { %v449_v10 = vmul.f32 %v447_v2, %v427_v49 }
  0xfc   :  { %v448_v38 = vmul.f32 %v446_v43, %v426_v42 }
  0xfd   :  { %v451_v47 = vadd.f32 %v1744_v36, %v449_v10 }
  0xfe   :  { %v450_v30 = vadd.f32 %v1746_v41, %v448_v38 }
 0x100   :  { %v1694_v27 = vpack.c.bf16 %v451_v47, %v450_v30 }
 0x102   :  { %1695 = vmatprep.subr.bf16.mxu1 %v1694_v27 }
 0x103   :  { %1697 = vmatpush3.bf16.msra.mxu1 %v1694_v27 }
 0x106   :  { %1601 = vmatmul.mubr.msk.f32.vlgmr.msra.gmra.mrb[0].mxu1 %vm294_vm0, %v1914_v1 }
 0x107   :  { %1603 = vmatprep.mubr.msk.f32.mxu1 %vm294_vm0, %v1921_v3 }
 0x10a   :  { %1604 = vmatmul.mubr.msk.f32.gmra.mrb[2].mxu1 %vm294_vm0, %v1936_v7 }
 0x10b   :  { %1606 = vmatprep.mubr.msk.f32.mxu1 %vm294_vm0, %v1944_v9 }
 0x10e   :  { %1607 = vmatmul.mubr.msk.f32.gmra.mrb[4].mxu1 %vm294_vm0, %v1958_v11 }
 0x10f   :  { %1626 = vmatprep.mubr.msk.f32.mxu1 %vm294_vm0, %v1909_v0 }
 0x1d9   :  { %v1602_v28 = vpop.f32.mrb[0].mxu1 }
 0x1da   :  { %v548_v48 = vadd.f32 %v1602_v28, %v2088_v19  ;;  %v518_v22 = vpop.f32.mrb[1].mxu1 }
 0x1db   :  { %v547_v8 = vadd.f32 %v518_v22, %v2049_v61 }
 0x1dc   :  { %v552_v57 = vmul.f32 0.5, %v548_v48 }
 0x1dd   :  { %v551_v40 = vmul.f32 0.5, %v547_v8  ;;  %v1605_v26 = vpop.f32.mrb[2].mxu1 }
 0x1de   :  { %1747 = vtanh.f32 %v552_v57  ;;  %v550_v35 = vadd.f32 %v1605_v26, %v2166_v12  ;;  %v528_v34 = vpop.f32.mrb[3].mxu1 }
 0x1df   :  { %1749 = vtanh.f32 %v551_v40  ;;  %v549_v37 = vadd.f32 %v528_v34, %v2143_v53 }
 0x1e0   :  { %v554_v33 = vmul.f32 0.5, %v550_v35 }
 0x1e1   :  { %v1608_v52 = vpop.f32.mrb[4].mxu1  ;;  %v553_v39 = vmul.f32 0.5, %v549_v37 }
 0x1e2   :  { %v538_v14 = vpop.f32.mrb[5].mxu1  ;;  %1751 = vtanh.f32 %v554_v33  ;;  %v568_v41 = vadd.f32 %v1608_v52, %v2211_v60 }
 0x1e3   :  { %1753 = vtanh.f32 %v553_v39  ;;  %v567_v12 = vadd.f32 %v538_v14, %v2205_v44 }
 0x1e8   :  { %v1748_v56 = vpop.eup %1747 }
 0x1e9   :  { %v1750_v16 = vpop.eup %1749  ;;  %v560_v19 = vmul.f32 0.5, %v1748_v56 }
 0x1ea   :  { %v559_v36 = vmul.f32 0.5, %v1750_v16 }
 0x1eb   :  { %v564_v61 = vadd.f32 0.5, %v560_v19 }
 0x1ec   :  { %v563_v49 = vadd.f32 0.5, %v559_v36  ;;  %v1752_v10 = vpop.eup %1751 }
 0x1ed   :  { %v570_v2 = vmul.f32 %v568_v41, %v564_v61  ;;  %v1754_v38 = vpop.eup %1753  ;;  %v562_v27 = vmul.f32 0.5, %v1752_v10 }
 0x1ee   :  { %v569_v42 = vmul.f32 %v567_v12, %v563_v49  ;;  %v561_v28 = vmul.f32 0.5, %v1754_v38 }
 0x1ef   :  { %v572_v53 = vadd.f32 %v570_v2, %v2227_v50  ;;  %v566_v8 = vadd.f32 0.5, %v562_v27 }
 0x1f0   :  { %v571_v43 = vadd.f32 %v569_v42, %v2213_v6  ;;  %v565_v40 = vadd.f32 0.5, %v561_v28 }
 0x1f1   :  { %1755 = vtanh.f32 %v572_v53 }
 0x1f2   :  { %1757 = vtanh.f32 %v571_v43 }
 0x1fb   :  { %v1756_v48 = vpop.eup %1755 }
 0x1fc   :  { %v1758_v22 = vpop.eup %1757  ;;  %v576_v57 = vsub.f32 %v451_v47, %v1756_v48 }
 0x1fd   :  { %v575_v26 = vsub.f32 %v450_v30, %v1758_v22 }
 0x1fe   :  { %v578_v35 = vmul.f32 %v576_v57, %v566_v8 }
 0x1ff   :  { %v577_v34 = vmul.f32 %v575_v26, %v565_v40 }
 0x200   :  { %v580_v37 = vadd.f32 %v1756_v48, %v578_v35 }
 0x201   :  { %v579_v52 = vadd.f32 %v1758_v22, %v577_v34 }
 0x203   :  { %v1698_v14 = vpack.c.bf16 %v580_v37, %v579_v52 }
 0x205   :  { %1699 = vmatprep.subr.bf16.mxu0 %v1698_v14 }
 0x206   :  { %1701 = vmatpush3.bf16.msra.mxu0 %v1698_v14 }
 0x209   :  { %1614 = vmatmul.mubr.msk.f32.vlgmr.msra.gmra.mrb[6].mxu0 %vm294_vm0, %v1914_v1 }
 0x20a   :  { %1616 = vmatprep.mubr.msk.f32.mxu0 %vm294_vm0, %v1921_v3 }
 0x20d   :  { %1617 = vmatmul.mubr.msk.f32.gmra.mrb[8].mxu0 %vm294_vm0, %v1936_v7 }
 0x20e   :  { %1619 = vmatprep.mubr.msk.f32.mxu0 %vm294_vm0, %v1944_v9 }
 0x211   :  { %1620 = vmatmul.mubr.msk.f32.gmra.mrb[10].mxu0 %vm294_vm0, %v1958_v11 }
 0x212   :  { %1639 = vmatprep.mubr.msk.f32.mxu0 %vm294_vm0, %v1909_v0 }
 0x2dc   :  { %v1615_v6 = vpop.f32.mrb[6].mxu0 }
 0x2dd   :  { %v677_v50 = vadd.f32 %v1615_v6, %v2091_v20  ;;  %v647_v47 = vpop.f32.mrb[7].mxu0 }
 0x2de   :  { %v676_v30 = vadd.f32 %v647_v47, %v2052_v62 }
 0x2df   :  { %v681_v33 = vmul.f32 0.5, %v677_v50 }
 0x2e0   :  { %v680_v56 = vmul.f32 0.5, %v676_v30  ;;  %v1618_v39 = vpop.f32.mrb[8].mxu0 }
 0x2e1   :  { %1759 = vtanh.f32 %v681_v33  ;;  %v679_v16 = vadd.f32 %v1618_v39, %v2169_v13  ;;  %v657_v19 = vpop.f32.mrb[9].mxu0 }
 0x2e2   :  { %1761 = vtanh.f32 %v680_v56  ;;  %v678_v36 = vadd.f32 %v657_v19, %v2146_v54 }
 0x2e3   :  { %v683_v49 = vmul.f32 0.5, %v679_v16 }
 0x2e4   :  { %v1621_v61 = vpop.f32.mrb[10].mxu0  ;;  %v682_v2 = vmul.f32 0.5, %v678_v36 }
 0x2e5   :  { %v667_v41 = vpop.f32.mrb[11].mxu0  ;;  %1763 = vtanh.f32 %v683_v49  ;;  %v697_v43 = vadd.f32 %v1621_v61, %v2211_v60 }
 0x2e6   :  { %1765 = vtanh.f32 %v682_v2  ;;  %v696_v13 = vadd.f32 %v667_v41, %v2205_v44 }
 0x2eb   :  { %v1760_v12 = vpop.eup %1759 }
 0x2ec   :  { %v1762_v42 = vpop.eup %1761  ;;  %v689_v20 = vmul.f32 0.5, %v1760_v12 }
 0x2ed   :  { %v688_v53 = vmul.f32 0.5, %v1762_v42 }
 0x2ee   :  { %v693_v62 = vadd.f32 0.5, %v689_v20 }
 0x2ef   :  { %v692_v10 = vadd.f32 0.5, %v688_v53  ;;  %v1764_v48 = vpop.eup %1763 }
 0x2f0   :  { %v699_v38 = vmul.f32 %v697_v43, %v693_v62  ;;  %v1766_v22 = vpop.eup %1765  ;;  %v691_v8 = vmul.f32 0.5, %v1764_v48 }
 0x2f1   :  { %v698_v27 = vmul.f32 %v696_v13, %v692_v10  ;;  %v690_v57 = vmul.f32 0.5, %v1766_v22 }
 0x2f2   :  { %v701_v54 = vadd.f32 %v699_v38, %v2229_v51  ;;  %v695_v35 = vadd.f32 0.5, %v691_v8 }
 0x2f3   :  { %v700_v28 = vadd.f32 %v698_v27, %v2215_v45  ;;  %v694_v14 = vadd.f32 0.5, %v690_v57 }
 0x2f4   :  { %1767 = vtanh.f32 %v701_v54 }
 0x2f5   :  { %1769 = vtanh.f32 %v700_v28 }
 0x2fe   :  { %v1768_v40 = vpop.eup %1767 }
 0x2ff   :  { %v1770_v26 = vpop.eup %1769  ;;  %v705_v34 = vsub.f32 %v580_v37, %v1768_v40 }
 0x300   :  { %v704_v6 = vsub.f32 %v579_v52, %v1770_v26 }
 0x301   :  { %v707_v50 = vmul.f32 %v705_v34, %v695_v35 }
 0x302   :  { %v706_v47 = vmul.f32 %v704_v6, %v694_v14 }
 0x303   :  { %v709_v30 = vadd.f32 %v1768_v40, %v707_v50 }
 0x304   :  { %v708_v33 = vadd.f32 %v1770_v26, %v706_v47 }
 0x306   :  { %v1702_v56 = vpack.c.bf16 %v709_v30, %v708_v33 }
 0x308   :  { %1703 = vmatprep.subr.bf16.mxu1 %v1702_v56 }
 0x309   :  { %1705 = vmatpush3.bf16.msra.mxu1 %v1702_v56 }
 0x30c   :  { %1627 = vmatmul.mubr.msk.f32.vlgmr.msra.gmra.mrb[6].mxu1 %vm294_vm0, %v1914_v1 }
 0x30d   :  { %1629 = vmatprep.mubr.msk.f32.mxu1 %vm294_vm0, %v1921_v3 }
 0x310   :  { %1630 = vmatmul.mubr.msk.f32.gmra.mrb[8].mxu1 %vm294_vm0, %v1936_v7 }
 0x311   :  { %1632 = vmatprep.mubr.msk.f32.mxu1 %vm294_vm0, %v1944_v9 }
 0x314   :  { %1633 = vmatmul.mubr.msk.f32.gmra.mrb[10].mxu1 %vm294_vm0, %v1958_v11 }
 0x315   :  { %1652 = vmatprep.mubr.msk.f32.mxu1 %vm294_vm0, %v1909_v0 }
 0x3df   :  { %v1628_v45 = vpop.f32.mrb[6].mxu1 }
 0x3e0   :  { %v806_v51 = vadd.f32 %v1628_v45, %v2094_v21  ;;  %v776_v37 = vpop.f32.mrb[7].mxu1 }
 0x3e1   :  { %v805_v52 = vadd.f32 %v776_v37, %v2055_v63 }
 0x3e2   :  { %v810_v39 = vmul.f32 0.5, %v806_v51 }
 0x3e3   :  { %v809_v16 = vmul.f32 0.5, %v805_v52  ;;  %v1631_v19 = vpop.f32.mrb[8].mxu1 }
 0x3e4   :  { %1771 = vtanh.f32 %v810_v39  ;;  %v808_v36 = vadd.f32 %v1631_v19, %v2172_v15  ;;  %v786_v61 = vpop.f32.mrb[9].mxu1 }
 0x3e5   :  { %1773 = vtanh.f32 %v809_v16  ;;  %v807_v41 = vadd.f32 %v786_v61, %v2149_v55 }
 0x3e6   :  { %v812_v2 = vmul.f32 0.5, %v808_v36 }
 0x3e7   :  { %v1634_v49 = vpop.f32.mrb[10].mxu1  ;;  %v811_v20 = vmul.f32 0.5, %v807_v41 }
 0x3e8   :  { %v796_v12 = vpop.f32.mrb[11].mxu1  ;;  %1775 = vtanh.f32 %v812_v2  ;;  %v826_v43 = vadd.f32 %v1634_v49, %v2211_v60 }
 0x3e9   :  { %1777 = vtanh.f32 %v811_v20  ;;  %v825_v15 = vadd.f32 %v796_v12, %v2205_v44 }
 0x3ee   :  { %v1772_v42 = vpop.eup %1771 }
 0x3ef   :  { %v1774_v53 = vpop.eup %1773  ;;  %v818_v21 = vmul.f32 0.5, %v1772_v42 }
 0x3f0   :  { %v817_v62 = vmul.f32 0.5, %v1774_v53 }
 0x3f1   :  { %v822_v63 = vadd.f32 0.5, %v818_v21 }
 0x3f2   :  { %v821_v10 = vadd.f32 0.5, %v817_v62  ;;  %v1776_v54 = vpop.eup %1775 }
 0x3f3   :  { %v828_v13 = vmul.f32 %v826_v43, %v822_v63  ;;  %v1778_v28 = vpop.eup %1777  ;;  %v820_v48 = vmul.f32 0.5, %v1776_v54 }
 0x3f4   :  { %v827_v38 = vmul.f32 %v825_v15, %v821_v10  ;;  %v819_v22 = vmul.f32 0.5, %v1778_v28 }
 0x3f5   :  { %v830_v55 = vadd.f32 %v828_v13, %v2231_v18  ;;  %v824_v40 = vadd.f32 0.5, %v820_v48 }
 0x3f6   :  { %v829_v27 = vadd.f32 %v827_v38, %v2217_v46  ;;  %v823_v35 = vadd.f32 0.5, %v819_v22 }
 0x3f7   :  { %1779 = vtanh.f32 %v830_v55 }
 0x3f8   :  { %1781 = vtanh.f32 %v829_v27 }
 0x401   :  { %v1780_v8 = vpop.eup %1779 }
 0x402   :  { %v1782_v57 = vpop.eup %1781  ;;  %v834_v26 = vsub.f32 %v709_v30, %v1780_v8 }
 0x403   :  { %v833_v34 = vsub.f32 %v708_v33, %v1782_v57 }
 0x404   :  { %v836_v14 = vmul.f32 %v834_v26, %v824_v40 }
 0x405   :  { %v835_v6 = vmul.f32 %v833_v34, %v823_v35 }
 0x406   :  { %v838_v50 = vadd.f32 %v1780_v8, %v836_v14 }
 0x407   :  { %v837_v47 = vadd.f32 %v1782_v57, %v835_v6  ;;  %v2440_v6 = vld [vmem:[#allocation12_spill] sm:$0xff] }
 0x409   :  { %v1706_v56 = vpack.c.bf16 %v838_v50, %v837_v47 }
 0x40b   :  { %1707 = vmatprep.subr.bf16.mxu0 %v1706_v56 }
 0x40c   :  { %1709 = vmatpush3.bf16.msra.mxu0 %v1706_v56  ;;  %v2441_v56 = vld [vmem:[#allocation9_spill] sm:$0xff] }
 0x40f   :  { %1640 = vmatmul.mubr.msk.f32.vlgmr.msra.gmra.mrb[12].mxu0 %vm294_vm0, %v1914_v1 }
 0x410   :  { %1642 = vmatprep.mubr.msk.f32.mxu0 %vm294_vm0, %v1921_v3 }
 0x413   :  { %1643 = vmatmul.mubr.msk.f32.gmra.mrb[14].mxu0 %vm294_vm0, %v1936_v7 }
 0x414   :  { %1645 = vmatprep.mubr.msk.f32.mxu0 %vm294_vm0, %v1944_v9 }
 0x417   :  { %1646 = vmatmul.mubr.msk.f32.gmra.mrb[16].mxu0 %vm294_vm0, %v1958_v11 }
 0x418   :  { %1665 = vmatprep.mubr.msk.f32.mxu0 %vm294_vm0, %v1909_v0 }
 0x4e2   :  { %v1641_v18 = vpop.f32.mrb[12].mxu0 }
 0x4e3   :  { %v935_v46 = vadd.f32 %v1641_v18, %v2099_v23  ;;  %v905_v30 = vpop.f32.mrb[13].mxu0 }
 0x4e4   :  { %v934_v33 = vadd.f32 %v905_v30, %v2060_v4 }
 0x4e5   :  { %v939_v45 = vmul.f32 0.5, %v935_v46 }
 0x4e6   :  { %v938_v51 = vmul.f32 0.5, %v934_v33  ;;  %v1644_v37 = vpop.f32.mrb[14].mxu0 }
 0x4e7   :  { %1783 = vtanh.f32 %v939_v45  ;;  %v937_v52 = vadd.f32 %v1644_v37, %v2177_v17  ;;  %v915_v39 = vpop.f32.mrb[15].mxu0 }
 0x4e8   :  { %1785 = vtanh.f32 %v938_v51  ;;  %v936_v16 = vadd.f32 %v915_v39, %v2154_v58 }
 0x4e9   :  { %v941_v61 = vmul.f32 0.5, %v937_v52 }
 0x4ea   :  { %v1647_v19 = vpop.f32.mrb[16].mxu0  ;;  %v940_v49 = vmul.f32 0.5, %v936_v16 }
 0x4eb   :  { %v925_v36 = vpop.f32.mrb[17].mxu0  ;;  %1787 = vtanh.f32 %v941_v61  ;;  %v955_v42 = vadd.f32 %v1647_v19, %v2211_v60 }
 0x4ec   :  { %1789 = vtanh.f32 %v940_v49  ;;  %v954_v17 = vadd.f32 %v925_v36, %v2205_v44 }
 0x4f1   :  { %v1784_v41 = vpop.eup %1783 }
 0x4f2   :  { %v1786_v12 = vpop.eup %1785  ;;  %v947_v23 = vmul.f32 0.5, %v1784_v41 }
 0x4f3   :  { %v946_v2 = vmul.f32 0.5, %v1786_v12 }
 0x4f4   :  { %v951_v4 = vadd.f32 0.5, %v947_v23 }
 0x4f5   :  { %v950_v20 = vadd.f32 0.5, %v946_v2  ;;  %v1788_v63 = vpop.eup %1787 }
 0x4f6   :  { %v957_v53 = vmul.f32 %v955_v42, %v951_v4  ;;  %v1790_v43 = vpop.eup %1789  ;;  %v949_v10 = vmul.f32 0.5, %v1788_v63 }
 0x4f7   :  { %v956_v21 = vmul.f32 %v954_v17, %v950_v20  ;;  %v948_v15 = vmul.f32 0.5, %v1790_v43 }
 0x4f8   :  { %v959_v58 = vadd.f32 %v957_v53, %v2233_v29  ;;  %v953_v55 = vadd.f32 0.5, %v949_v10 }
 0x4f9   :  { %v958_v62 = vadd.f32 %v956_v21, %v2219_v25  ;;  %v952_v54 = vadd.f32 0.5, %v948_v15  ;;  %v2442_v15 = vld [vmem:[#allocation7_spill] sm:$0xff] }
 0x4fa   :  { %1791 = vtanh.f32 %v959_v58 }
 0x4fb   :  { %1793 = vtanh.f32 %v958_v62 }
 0x504   :  { %v1792_v13 = vpop.eup %1791 }
 0x505   :  { %v1794_v38 = vpop.eup %1793  ;;  %v963_v27 = vsub.f32 %v838_v50, %v1792_v13 }
 0x506   :  { %v962_v28 = vsub.f32 %v837_v47, %v1794_v38 }
 0x507   :  { %v965_v48 = vmul.f32 %v963_v27, %v953_v55  ;;  %v2443_v55 = vld [vmem:[#allocation5_spill] sm:$0xff] }
 0x508   :  { %v964_v22 = vmul.f32 %v962_v28, %v952_v54 }
 0x509   :  { %v967_v8 = vadd.f32 %v1792_v13, %v965_v48 }
 0x50a   :  { %v966_v57 = vadd.f32 %v1794_v38, %v964_v22 }
 0x50c   :  { %v1710_v40 = vpack.c.bf16 %v967_v8, %v966_v57 }
 0x50e   :  { %1711 = vmatprep.subr.bf16.mxu1 %v1710_v40 }
 0x50f   :  { %1713 = vmatpush3.bf16.msra.mxu1 %v1710_v40 }
 0x512   :  { %1653 = vmatmul.mubr.msk.f32.vlgmr.msra.gmra.mrb[12].mxu1 %vm294_vm0, %v1914_v1 }
 0x513   :  { %1655 = vmatprep.mubr.msk.f32.mxu1 %vm294_vm0, %v1921_v3 }
 0x516   :  { %1656 = vmatmul.mubr.msk.f32.gmra.mrb[14].mxu1 %vm294_vm0, %v1936_v7 }
 0x517   :  { %1658 = vmatprep.mubr.msk.f32.mxu1 %vm294_vm0, %v1944_v9 }
 0x51a   :  { %1659 = vmatmul.mubr.msk.f32.gmra.mrb[16].mxu1 %vm294_vm0, %v1958_v11 }
 0x51b   :  { %1678 = vmatprep.mubr.msk.f32.mxu1 %vm294_vm0, %v1909_v0 }
 0x5e5   :  { %v1654_v25 = vpop.f32.mrb[12].mxu1 }
 0x5e6   :  { %v1064_v29 = vadd.f32 %v1654_v25, %v2102_v24  ;;  %v1034_v26 = vpop.f32.mrb[13].mxu1 }
 0x5e7   :  { %v1063_v1 = vadd.f32 %v1034_v26, %v2063_v5 }
 0x5e8   :  { %v1068_v35 = vmul.f32 0.5, %v1064_v29 }
 0x5e9   :  { %v1067_v34 = vmul.f32 0.5, %v1063_v1  ;;  %v1657_v14 = vpop.f32.mrb[14].mxu1 }
 0x5ea   :  { %1795 = vtanh.f32 %v1068_v35  ;;  %v1066_v50 = vadd.f32 %v1657_v14, %v2440_v6  ;;  %v1044_v47 = vpop.f32.mrb[15].mxu1 }
 0x5eb   :  { %1797 = vtanh.f32 %v1067_v34  ;;  %v1065_v18 = vadd.f32 %v1044_v47, %v2441_v56 }
 0x5ec   :  { %v1070_v33 = vmul.f32 0.5, %v1066_v50 }
 0x5ed   :  { %v1660_v46 = vpop.f32.mrb[16].mxu1  ;;  %v1069_v45 = vmul.f32 0.5, %v1065_v18 }
 0x5ee   :  { %v1054_v30 = vpop.f32.mrb[17].mxu1  ;;  %1799 = vtanh.f32 %v1070_v33  ;;  %v1084_v52 = vadd.f32 %v1660_v46, %v2211_v60  ;;  %v2446_v46 = vld [vmem:[#allocation15_spill] sm:$0xff] }
 0x5ef   :  { %1801 = vtanh.f32 %v1069_v45  ;;  %v1083_v16 = vadd.f32 %v1054_v30, %v2205_v44 }
 0x5f4   :  { %v1796_v0 = vpop.eup %1795 }
 0x5f5   :  { %v1798_v51 = vpop.eup %1797  ;;  %v1076_v24 = vmul.f32 0.5, %v1796_v0 }
 0x5f6   :  { %v1075_v37 = vmul.f32 0.5, %v1798_v51 }
 0x5f7   :  { %v1080_v5 = vadd.f32 0.5, %v1076_v24 }
 0x5f8   :  { %v1079_v39 = vadd.f32 0.5, %v1075_v37  ;;  %v1800_v49 = vpop.eup %1799 }
 0x5f9   :  { %v1086_v19 = vmul.f32 %v1084_v52, %v1080_v5  ;;  %v1802_v12 = vpop.eup %1801  ;;  %v1078_v23 = vmul.f32 0.5, %v1800_v49 }
 0x5fa   :  { %v1085_v36 = vmul.f32 %v1083_v16, %v1079_v39  ;;  %v1077_v2 = vmul.f32 0.5, %v1802_v12  ;;  %v1833_v12 = vld [vmem:[%s2423_s4 + $0x18] sm:$0xff] }
 0x5fb   :  { %v1088_v61 = vadd.f32 %v1086_v19, %v2235_v31  ;;  %v1082_v20 = vadd.f32 0.5, %v1078_v23  ;;  %v1834_v23 = vld [vmem:[%s2423_s4 + $0x20] sm:$0xff] }
 0x5fc   :  { %v1087_v41 = vadd.f32 %v1085_v36, %v2221_v59  ;;  %v1081_v53 = vadd.f32 0.5, %v1077_v2  ;;  %v1831_v59 = vld [vmem:[%s2423_s4 + $0x8] sm:$0xff] }
 0x5fd   :  { %1803 = vtanh.f32 %v1088_v61  ;;  %v1835_v2 = vld [vmem:[%s2423_s4 + $0x28] sm:$0xff] }
 0x5fe   :  { %1805 = vtanh.f32 %v1087_v41 }
 0x607   :  { %v1804_v4 = vpop.eup %1803 }
 0x608   :  { %v1806_v42 = vpop.eup %1805  ;;  %v1092_v17 = vsub.f32 %v967_v8, %v1804_v4 }
 0x609   :  { %v1091_v21 = vsub.f32 %v966_v57, %v1806_v42 }
 0x60a   :  { %v1094_v58 = vmul.f32 %v1092_v17, %v1082_v20  ;;  %v2447_v20 = vld [vmem:[#allocation8_spill] sm:$0xff] }
 0x60b   :  { %v1093_v62 = vmul.f32 %v1091_v21, %v1081_v53  ;;  %v2448_v21 = vld [vmem:[#allocation6_spill] sm:$0xff] }
 0x60c   :  { %v1096_v63 = vadd.f32 %v1804_v4, %v1094_v58  ;;  %v1355_v4 = vld [vmem:[%s2424_s5] sm:$0xff] }
 0x60d   :  { %v1095_v43 = vadd.f32 %v1806_v42, %v1093_v62 }
 0x60f   :  { %v1714_v10 = vpack.c.bf16 %v1096_v63, %v1095_v43 }
 0x611   :  { %1715 = vmatprep.subr.bf16.mxu0 %v1714_v10 }
 0x612   :  { %1717 = vmatpush3.bf16.msra.mxu0 %v1714_v10  ;;  %v2449_v10 = vld [vmem:[#allocation14_spill] sm:$0xff] }
 0x615   :  { %1666 = vmatmul.mubr.msk.f32.vlgmr.msra.gmra.mrb[18].mxu0 %vm294_vm0, %v1831_v59 }
 0x616   :  { %1668 = vmatprep.mubr.msk.f32.mxu0 %vm294_vm0, %v1921_v3  ;;  %v2444_v3 = vld [vmem:[#allocation13_spill] sm:$0xff] }
 0x619   :  { %1669 = vmatmul.mubr.msk.f32.gmra.mrb[20].mxu0 %vm294_vm0, %v1936_v7  ;;  %v2445_v7 = vld [vmem:[#allocation10_spill] sm:$0xff] }
 0x61a   :  { %1671 = vmatprep.mubr.msk.f32.mxu0 %vm294_vm0, %v1944_v9 }
 0x61d   :  { %1672 = vmatmul.mubr.msk.f32.gmra.mrb[22].mxu0 %vm294_vm0, %v1958_v11 }
 0x61e   :  { %1691 = vmatprep.mubr.msk.f32.mxu0 %vm294_vm0, %v1355_v4 }
 0x6e8   :  { %v1667_v31 = vpop.f32.mrb[18].mxu0 }
 0x6e9   :  { %v1193_v13 = vadd.f32 %v1667_v31, %v2442_v15  ;;  %v1163_v38 = vpop.f32.mrb[19].mxu0  ;;  %v2450_v15 = vld [vmem:[#allocation11_spill] sm:$0xff] }
 0x6ea   :  { %v1192_v27 = vadd.f32 %v1163_v38, %v2443_v55 }
 0x6eb   :  { %v1197_v54 = vmul.f32 0.5, %v1193_v13 }
 0x6ec   :  { %v1196_v28 = vmul.f32 0.5, %v1192_v27  ;;  %v1670_v48 = vpop.f32.mrb[20].mxu0 }
 0x6ed   :  { %1807 = vtanh.f32 %v1197_v54  ;;  %v1195_v22 = vadd.f32 %v1670_v48, %v2444_v3  ;;  %v1173_v8 = vpop.f32.mrb[21].mxu0 }
 0x6ee   :  { %1809 = vtanh.f32 %v1196_v28  ;;  %v1194_v57 = vadd.f32 %v1173_v8, %v2445_v7 }
 0x6ef   :  { %v1199_v25 = vmul.f32 0.5, %v1195_v22 }
 0x6f0   :  { %v1673_v9 = vpop.f32.mrb[22].mxu0  ;;  %v1198_v29 = vmul.f32 0.5, %v1194_v57 }
 0x6f1   :  { %v1183_v40 = vpop.f32.mrb[23].mxu0  ;;  %1811 = vtanh.f32 %v1199_v25  ;;  %v1213_v14 = vadd.f32 %v1673_v9, %v2211_v60 }
 0x6f2   :  { %1813 = vtanh.f32 %v1198_v29  ;;  %v1212_v50 = vadd.f32 %v1183_v40, %v2205_v44 }
 0x6f7   :  { %v1808_v11 = vpop.eup %1807 }
 0x6f8   :  { %v1810_v26 = vpop.eup %1809  ;;  %v1205_v1 = vmul.f32 0.5, %v1808_v11  ;;  %v2451_v11 = vld [vmem:[#allocation17_spill] sm:$0xff] }
 0x6f9   :  { %v1204_v35 = vmul.f32 0.5, %v1810_v26  ;;  %v2452_v26 = vld [vmem:[#allocation16_spill] sm:$0xff] }
 0x6fa   :  { %v1209_v34 = vadd.f32 0.5, %v1205_v1 }
 0x6fb   :  { %v1208_v6 = vadd.f32 0.5, %v1204_v35  ;;  %v1812_v33 = vpop.eup %1811 }
 0x6fc   :  { %v1215_v47 = vmul.f32 %v1213_v14, %v1209_v34  ;;  %v1814_v0 = vpop.eup %1813  ;;  %v1207_v45 = vmul.f32 0.5, %v1812_v33 }
 0x6fd   :  { %v1214_v56 = vmul.f32 %v1212_v50, %v1208_v6  ;;  %v1206_v51 = vmul.f32 0.5, %v1814_v0 }
 0x6fe   :  { %v1217_v18 = vadd.f32 %v1215_v47, %v2237_v32  ;;  %v1211_v5 = vadd.f32 0.5, %v1207_v45  ;;  %v1832_v32 = vld [vmem:[%s2423_s4 + $0x10] sm:$0xff] }
 0x6ff   :  { %v1216_v30 = vadd.f32 %v1214_v56, %v2446_v46  ;;  %v1210_v39 = vadd.f32 0.5, %v1206_v51  ;;  %v1356_v51 = vld [vmem:[%s2424_s5 + $0x8] sm:$0xff] }
 0x700   :  { %1815 = vtanh.f32 %v1217_v18 }
 0x701   :  { %1817 = vtanh.f32 %v1216_v30 }
 0x70a   :  { %v1816_v24 = vpop.eup %1815 }
 0x70b   :  { %v1818_v37 = vpop.eup %1817  ;;  %v1221_v52 = vsub.f32 %v1096_v63, %v1816_v24 }
 0x70c   :  { %v1220_v16 = vsub.f32 %v1095_v43, %v1818_v37 }
 0x70d   :  { %v1223_v19 = vmul.f32 %v1221_v52, %v1211_v5  ;;  %v1362_v5 = vpop.permute.xlu0 %1361 }
 0x70e   :  { %v1222_v36 = vmul.f32 %v1220_v16, %v1210_v39 }
 0x70f   :  { %v1225_v61 = vadd.f32 %v1816_v24, %v1223_v19  ;;  %v1367_v24 = vpop.permute.xlu1 %1366 }
 0x710   :  { %v1224_v41 = vadd.f32 %v1818_v37, %v1222_v36 }
 0x712   :  { %v1718_v49 = vpack.c.bf16 %v1225_v61, %v1224_v41 }
 0x714   :  { %1719 = vmatprep.subr.bf16.mxu1 %v1718_v49 }
 0x715   :  { %1721 = vmatpush3.bf16.msra.mxu1 %v1718_v49 }
 0x718   :  { %1679 = vmatmul.mubr.msk.f32.vlgmr.msra.gmra.mrb[18].mxu1 %vm294_vm0, %v1831_v59 }
 0x719   :  { %1681 = vmatprep.mubr.msk.f32.mxu1 %vm294_vm0, %v1832_v32 }
 0x71c   :  { %1682 = vmatmul.mubr.msk.f32.gmra.mrb[20].mxu1 %vm294_vm0, %v1833_v12 }
 0x71d   :  { %1684 = vmatprep.mubr.msk.f32.mxu1 %vm294_vm0, %v1834_v23 }
 0x720   :  { %1685 = vmatmul.mubr.msk.f32.gmra.mrb[22].mxu1 %vm294_vm0, %v1835_v2 }
 0x7eb   :  { %v1680_v42 = vpop.f32.mrb[18].mxu1 }
 0x7ec   :  { %v1322_v17 = vadd.f32 %v1680_v42, %v2447_v20  ;;  %v1292_v53 = vpop.f32.mrb[19].mxu1 }
 0x7ed   :  { %v1321_v58 = vadd.f32 %v1292_v53, %v2448_v21 }
 0x7ee   :  { %v1326_v62 = vmul.f32 0.5, %v1322_v17 }
 0x7ef   :  { %v1325_v63 = vmul.f32 0.5, %v1321_v58  ;;  %v1683_v43 = vpop.f32.mrb[20].mxu1 }
 0x7f0   :  { %1819 = vtanh.f32 %v1326_v62  ;;  %v1324_v59 = vadd.f32 %v1683_v43, %v2449_v10  ;;  %v1302_v31 = vpop.f32.mrb[21].mxu1 }
 0x7f1   :  { %1821 = vtanh.f32 %v1325_v63  ;;  %v1323_v13 = vadd.f32 %v1302_v31, %v2450_v15 }
 0x7f2   :  { %v1328_v27 = vmul.f32 0.5, %v1324_v59 }
 0x7f3   :  { %v1686_v38 = vpop.f32.mrb[22].mxu1  ;;  %v1327_v28 = vmul.f32 0.5, %v1323_v13 }
 0x7f4   :  { %v1312_v55 = vpop.f32.mrb[23].mxu1  ;;  %1823 = vtanh.f32 %v1328_v27  ;;  %v1342_v7 = vadd.f32 %v1686_v38, %v2211_v60 }
 0x7f5   :  { %1825 = vtanh.f32 %v1327_v28  ;;  %v1341_v9 = vadd.f32 %v1312_v55, %v2205_v44 }
 0x7fa   :  { %v1820_v54 = vpop.eup %1819 }
 0x7fb   :  { %v1822_v48 = vpop.eup %1821  ;;  %v1334_v3 = vmul.f32 0.5, %v1820_v54 }
 0x7fc   :  { %v1333_v22 = vmul.f32 0.5, %v1822_v48 }
 0x7fd   :  { %v1338_v8 = vadd.f32 0.5, %v1334_v3 }
 0x7fe   :  { %v1337_v57 = vadd.f32 0.5, %v1333_v22  ;;  %v1824_v35 = vpop.eup %1823 }
 0x7ff   :  { %v1344_v40 = vmul.f32 %v1342_v7, %v1338_v8  ;;  %v1826_v34 = vpop.eup %1825  ;;  %v1336_v14 = vmul.f32 0.5, %v1824_v35 }
 0x800   :  { %v1343_v25 = vmul.f32 %v1341_v9, %v1337_v57  ;;  %v1335_v6 = vmul.f32 0.5, %v1826_v34 }
 0x801   :  { %v1346_v29 = vadd.f32 %v1344_v40, %v2451_v11  ;;  %v1340_v56 = vadd.f32 0.5, %v1336_v14 }
 0x802   :  { %v1345_v1 = vadd.f32 %v1343_v25, %v2452_v26  ;;  %v1339_v18 = vadd.f32 0.5, %v1335_v6 }
 0x803   :  { %1827 = vtanh.f32 %v1346_v29 }
 0x804   :  { %1829 = vtanh.f32 %v1345_v1 }
 0x80d   :  { %v1828_v50 = vpop.eup %1827 }
 0x80e   :  { %v1830_v47 = vpop.eup %1829  ;;  %v1350_v60 = vsub.f32 %v1225_v61, %v1828_v50 }
 0x80f   :  { %v1349_v46 = vsub.f32 %v1224_v41, %v1830_v47 }
 0x810   :  { %v1352_v30 = vmul.f32 %v1350_v60, %v1340_v56 }
 0x811   :  { %v1351_v44 = vmul.f32 %v1349_v46, %v1339_v18 }
 0x812   :  { %v1354_v33 = vadd.f32 %v1828_v50, %v1352_v30 }
 0x813   :  { %v1353_v0 = vadd.f32 %v1830_v47, %v1351_v44 }
 0x815   :  { %v1722_v45 = vpack.c.bf16 %v1354_v33, %v1353_v0 }
 0x817   :  { %1723 = vmatprep.subr.bf16.mxu0 %v1722_v45 }
 0x818   :  { %1725 = vmatpush3.bf16.msra.mxu0 %v1722_v45 }
 0x81b   :  { %1692 = vmatmul.mubr.msk.f32.vlgmr.msra.gmra.mrb[24].mxu0 %vm294_vm0, %v1356_v51 }
 0x8ee   :  { %v1693_v37 = vpop.f32.mrb[24].mxu0 }
 0x8ef   :  { %v1447_v52 = vadd.f32 %v1693_v37, %v1367_v24  ;;  %v1441_v39 = vpop.f32.mrb[25].mxu0 }
 0x8f0   :  { %v1442_v16 = vadd.f32 %v1441_v39, %v1362_v5 }
 0x8f1   :  { %1451 = vst [vmem:[#allocation2 + $0x8] sm:$0xff] %v1447_v52 }
 0x8f2   :  { %1450 = vst [vmem:[#allocation2] sm:$0xff] %v1442_v16 }
 0x8f3   :  { %1847 = shalt.err (!%p1844_p4)
}
 0x8f4   :  { %s1848_s13 = scalar_lea.hbm %s2426_s7, 256 }
 0x8f5   :  { %p1849_p5 = scmp.ne.s32.totalorder %s2426_s7, %s1848_s13  ;;  %p1852_p6 = scmp.lt.u32.totalorder %s1848_s13, %s2426_s7 }
 0x8f7   :  { %p1854_p7 = pnand %p1852_p6, %p1849_p5 }
 0x8f9   :  { %1857 = shalt.err (!%p1854_p7)
}
 0x8fa   :  { %s1864_s1 = smov 128   ;;  %s1865_s18 = smov 8  }
 0x8fb   :  { %1463 = dma.vmem_to_hbm [thread:$0]  %s1458_s10, 256, %s2426_s7, [#allocation3], %s1864_s1, %s1864_s1, %s1865_s18  }
 0x8fc   :  { %1858 = dma.done.wait [#allocation3], 256  }
 0x8fd   :  { %1859 = vsyncadd [#allocation3], 4294967040 }
 0x8fe   :  { %1467 = vsyncpa [#allocation3], 1 }

</bundles_post_ra>
